<compile_context>
chip_gen: v7x
topology: tpu7x:2x2x1
jax: 0.10.0
libtpu: 0.0.40
codegen_flags: <defaults>
</compile_context>

<pallas_src>
import functools

import jax
import jax.numpy as jnp
import numpy as np
from jax.experimental import pallas as pl
from jax.experimental.pallas import tpu as pltpu


# ----------------------------------------------------------------------------
# Fused kernel: unwrap + postprocess + concat + conv1 + ReLU + conv2 (one image)
# ----------------------------------------------------------------------------
def _spyrit_fused_kernel(x_ref, u_ref, w1_ref, b1_ref, w2_ref, b2_ref, mask_ref,
                         o_ref, den_ref, h1_ref,
                         *, CM, CDEN_P, HID, WP, P, S1, L1, S2, L2):
    # ---- unwrap (VPU broadcast-FMA, U scalars from SMEM) + postprocess -------------
    xd = x_ref[0, 0:CM, :]            # (CM, P) f32, data channels (zero on the pad ring)
    wt = x_ref[0, CM:CM + 1, :]       # (1,  P) f32, Doppler-power weight
    v = xd * wt                       # weighted aliased input fed to unwrap

    # denoiser input (channels-first): [x_data, W, y, zero-pad-to-8]; kept in VMEM only.
    den_ref[0:CM, :] = xd
    den_ref[CM:CM + 1, :] = wt
    for c in range(CM):
        z_c = u_ref[c, 0] * v[0:1, :]
        for k in range(1, CM):
            z_c = z_c + u_ref[c, k] * v[k:k + 1, :]
        # postprocess: n = round((z_hat - W*x)/2); n[|n|>1]=0; y = x + 2n
        n_c = jnp.round((z_c - wt * xd[c:c + 1, :]) * 0.5)
        n_c = jnp.where(jnp.abs(n_c) > 1.0, jnp.zeros_like(n_c), n_c)
        den_ref[CM + 1 + c:CM + 2 + c, :] = xd[c:c + 1, :] + 2.0 * n_c
    if CDEN_P > 2 * CM + 1:           # zero channels that pad K up to a multiple of 8
        den_ref[2 * CM + 1:CDEN_P, :] = jnp.zeros((CDEN_P - 2 * CM - 1, P), jnp.float32)

    # ---- conv1 (3x3, pad=1) as 9 shifted matmuls on the flat pixel axis -------------
    acc1 = jnp.zeros((HID, L1), jnp.float32)
    for t in range(9):
        ky, kx = t // 3, t % 3
        off = S1 + (ky - 1) * WP + (kx - 1)
        sl = den_ref[:, off:off + L1].astype(jnp.bfloat16)      # (CDEN_P, L1)
        acc1 = acc1 + jnp.dot(w1_ref[t], sl, preferred_element_type=jnp.float32)
    # mask zeroes h1 outside the true image == zero padding of h1 for conv2
    h1 = jnp.maximum(acc1 + b1_ref[...], 0.0) * mask_ref[...]   # (HID, L1) f32
    h1_ref[...] = h1.astype(jnp.bfloat16)

    # ---- conv2 (3x3, pad=1) ----------------------------------------------------------
    acc2 = jnp.zeros((CM, L2), jnp.float32)
    for t in range(9):
        ky, kx = t // 3, t % 3
        off = (S2 - S1) + (ky - 1) * WP + (kx - 1)
        sl = h1_ref[:, off:off + L2]                            # (HID, L2) bf16
        acc2 = acc2 + jnp.dot(w2_ref[t], sl, preferred_element_type=jnp.float32)
    o_ref[0] = acc2 + b2_ref[...]                               # lane-dense (CM, L2) store


# ----------------------------------------------------------------------------
# Host wrapper
# ----------------------------------------------------------------------------
def spyrit_net_forward(x, params):
    """SpyritNet.forward: y = denoiser(concat([x_data, W, postprocess(unwrap(x_data*W))]))."""
    B, C, H, W = x.shape
    CM = C - 1                          # data channels
    CDEN = 2 * C - 1                    # denoiser input channels
    CDEN_P = ((CDEN + 7) // 8) * 8      # pad contraction dim to a multiple of 8
    HID = params["w1"].shape[0]

    HP, WP = H + 4, W + 4               # 2-pixel zero pad ring on each side
    P = HP * WP
    S1, L1 = WP + 1, (H + 2) * WP - 2   # flat frame where conv1 output (h1) is computed
    S2, L2 = 2 * WP + 2, H * WP - 4     # flat frame where conv2 output is computed

    # channels-first, spatially zero-padded, pixels flattened onto the lane axis
    xp = jnp.pad(x, ((0, 0), (0, 0), (2, 2), (2, 2))).reshape(B, C, P)

    # conv weights -> (tap, Cout, Cin_padded), bf16 for the MXU; biases as (Cout, 1)
    w1 = params["w1"]                   # (HID, CDEN, 3, 3)
    w2 = params["w2"]                   # (CM,  HID,  3, 3)
    w1k = jnp.zeros((9, HID, CDEN_P), jnp.float32)
    w1k = w1k.at[:, :, :CDEN].set(w1.transpose(2, 3, 0, 1).reshape(9, HID, CDEN))
    w1k = w1k.astype(jnp.bfloat16)
    w2k = w2.transpose(2, 3, 0, 1).reshape(9, CM, HID).astype(jnp.bfloat16)
    b1c = params["b1"].reshape(HID, 1).astype(jnp.float32)
    b2c = params["b2"].reshape(CM, 1).astype(jnp.float32)

    # host-built mask: 1 where the flat h1 position lies inside the true image
    q = np.arange(S1, S1 + L1)
    r_, c_ = q // WP, q % WP
    keep = (r_ >= 2) & (r_ < H + 2) & (c_ >= 2) & (c_ < W + 2)
    mask = jnp.asarray(keep.astype(np.float32)[None, :])            # (1, L1)

    kern = functools.partial(_spyrit_fused_kernel, CM=CM, CDEN_P=CDEN_P, HID=HID,
                             WP=WP, P=P, S1=S1, L1=L1, S2=S2, L2=L2)

    out = pl.pallas_call(
        kern,
        out_shape=jax.ShapeDtypeStruct((B, CM, L2), jnp.float32),
        grid=(B,),
        in_specs=[
            pl.BlockSpec((1, C, P), lambda b: (b, 0, 0)),                    # x (per image)
            pl.BlockSpec(memory_space=pltpu.MemorySpace.SMEM),               # U (scalars)
            pl.BlockSpec((9, HID, CDEN_P), lambda b: (0, 0, 0)),             # w1 taps
            pl.BlockSpec((HID, 1), lambda b: (0, 0)),                        # b1
            pl.BlockSpec((9, CM, HID), lambda b: (0, 0, 0)),                 # w2 taps
            pl.BlockSpec((CM, 1), lambda b: (0, 0)),                         # b2
            pl.BlockSpec((1, L1), lambda b: (0, 0)),                         # h1 mask
        ],
        out_specs=pl.BlockSpec((1, CM, L2), lambda b: (b, 0, 0)),
        scratch_shapes=[
            pltpu.VMEM((CDEN_P, P), jnp.float32),    # denoiser input (VMEM-resident)
            pltpu.VMEM((HID, L1), jnp.bfloat16),     # conv1 activation (VMEM-resident)
        ],
        compiler_params=pltpu.CompilerParams(
            dimension_semantics=("parallel",),       # batch tiles -> both TCs on v7x
            vmem_limit_bytes=32 * 1024 * 1024,
        ),
    )(xp, params["U"].astype(jnp.float32), w1k, b1c, w2k, b2c, mask)

    # gather the lane-dense output slab back to (B, CM, H, W):
    # true pixel (i, k) sits at flat offset i*WP + k within the L2 slab.
    out = jnp.pad(out, ((0, 0), (0, 0), (0, H * WP - L2)))
    return out.reshape(B, CM, H, WP)[:, :, :, :W]


# ----------------------------------------------------------------------------
# Pure-JAX reference (same math & bf16 conv-input quantization, no Pallas)
# ----------------------------------------------------------------------------
def reference_forward(x, params):
    B, C, H, W = x.shape
    CM = C - 1
    xd = x[:, :-1]
    wt = x[:, -1:]
    v = xd * wt
    z = sum(params["U"][:, k][None, :, None, None] * v[:, k:k + 1] for k in range(CM))
    n = jnp.round((z - wt * xd) * 0.5)
    n = jnp.where(jnp.abs(n) > 1.0, 0.0, n)
    y = xd + 2.0 * n
    den = jnp.concatenate([xd, wt, y], axis=1)

    def conv(xc, w, b, relu):
        Bc, Cc, Hc, Wc = xc.shape
        Cout = w.shape[0]
        xpad = jnp.pad(xc, ((0, 0), (0, 0), (1, 1), (1, 1)))
        cols = [xpad[:, :, ky:ky + Hc, kx:kx + Wc] for ky in range(3) for kx in range(3)]
        A = jnp.stack(cols, axis=2).transpose(0, 3, 4, 1, 2).reshape(Bc * Hc * Wc, Cc * 9)
        Wm = w.transpose(1, 2, 3, 0).reshape(Cc * 9, Cout)
        o = jnp.dot(A.astype(jnp.bfloat16), Wm.astype(jnp.bfloat16),
                    preferred_element_type=jnp.float32) + b[None, :]
        if relu:
            o = jnp.maximum(o, 0.0)
        return o.reshape(Bc, Hc, Wc, Cout).transpose(0, 3, 1, 2)

    h1 = conv(den, params["w1"], params["b1"], True)
    return conv(h1, params["w2"], params["b2"], False)


if __name__ == "__main__":
    B, C, H, W = 2, 4, 16, 16       # C-1 = 3 data channels + 1 power-weight channel
    HID = 16
    CM = C - 1
    CDEN = 2 * C - 1                # denoiser input channels: (C-1) + 1 + (C-1)

    key = jax.random.PRNGKey(0)
    k_x, k_w, k_u, k1, k2 = jax.random.split(key, 5)

    x_data = jax.random.normal(k_x, (B, CM, H, W), dtype=jnp.float32)
    x_power = jax.nn.sigmoid(jax.random.normal(k_w, (B, 1, H, W), dtype=jnp.float32))
    x = jnp.concatenate([x_data, x_power], axis=1)               # (B, C, H, W)

    params = {
        "U": jnp.eye(CM, dtype=jnp.float32)
             + 0.05 * jax.random.normal(k_u, (CM, CM), dtype=jnp.float32),
        "w1": 0.1 * jax.random.normal(k1, (HID, CDEN, 3, 3), dtype=jnp.float32),
        "b1": jnp.linspace(-0.1, 0.1, HID, dtype=jnp.float32),
        "w2": 0.1 * jax.random.normal(k2, (CM, HID, 3, 3), dtype=jnp.float32),
        "b2": jnp.linspace(-0.05, 0.05, CM, dtype=jnp.float32),
    }

    fwd = jax.jit(spyrit_net_forward)
    out = jax.block_until_ready(fwd(x, params))

    ref = jax.block_until_ready(reference_forward(x, params))
    assert out.shape == (B, CM, H, W), out.shape
    # tolerance covers bf16 MXU-input quantization (mirrored in the reference) and
    # f32 accumulation-order differences between 9 partial dots and one im2col dot.
    np.testing.assert_allclose(np.asarray(out), np.asarray(ref), rtol=1e-2, atol=1e-2)

    print("KERNEL_OK")
</pallas_src>

<mosaic_0001>
module attributes {stable_mosaic.version = 11 : i64} {
  func.func @_spyrit_fused_kernel(%arg0: i32, %arg1: memref<1x4x400xf32, #tpu.memory_space<vmem>>, %arg2: memref<3x3xf32, #tpu.memory_space<smem>>, %arg3: memref<9x16x8xbf16, #tpu.memory_space<vmem>>, %arg4: memref<16x1xf32, #tpu.memory_space<vmem>>, %arg5: memref<9x3x16xbf16, #tpu.memory_space<vmem>>, %arg6: memref<3x1xf32, #tpu.memory_space<vmem>>, %arg7: memref<1x358xf32, #tpu.memory_space<vmem>>, %arg8: memref<1x3x316xf32, #tpu.memory_space<vmem>>, %arg9: memref<8x400xf32, #tpu.memory_space<vmem>>, %arg10: memref<16x358xbf16, #tpu.memory_space<vmem>>) attributes {dimension_semantics = [#tpu.dimension_semantics<parallel>], iteration_bounds = array<i64: 2>, scalar_prefetch = 0 : i64, scratch_operands = 2 : i64, tpu.core_type = #tpu.core_type<tc>, window_params = [{transform_indices = @transform_0, window_bounds = array<i64: 1, 4, 400>}, {transform_indices = @transform_1, window_bounds = array<i64: 3, 3>}, {pipeline_mode = #tpu.pipeline_mode<synchronous>, transform_indices = @transform_2, window_bounds = array<i64: 9, 16, 8>}, {pipeline_mode = #tpu.pipeline_mode<synchronous>, transform_indices = @transform_3, window_bounds = array<i64: 16, 1>}, {pipeline_mode = #tpu.pipeline_mode<synchronous>, transform_indices = @transform_4, window_bounds = array<i64: 9, 3, 16>}, {pipeline_mode = #tpu.pipeline_mode<synchronous>, transform_indices = @transform_5, window_bounds = array<i64: 3, 1>}, {pipeline_mode = #tpu.pipeline_mode<synchronous>, transform_indices = @transform_6, window_bounds = array<i64: 1, 358>}, {transform_indices = @transform_7, window_bounds = array<i64: 1, 3, 316>}]} {
    %c0 = arith.constant 0 : index
    %c0_0 = arith.constant 0 : index
    %c0_1 = arith.constant 0 : index
    %0 = vector.load %arg1[%c0, %c0_0, %c0_1] : memref<1x4x400xf32, #tpu.memory_space<vmem>>, vector<1x3x400xf32>
    %1 = vector.shape_cast %0 : vector<1x3x400xf32> to vector<3x400xf32>
    %c0_2 = arith.constant 0 : index
    %c3 = arith.constant 3 : index
    %c0_3 = arith.constant 0 : index
    %2 = vector.load %arg1[%c0_2, %c3, %c0_3] : memref<1x4x400xf32, #tpu.memory_space<vmem>>, vector<1x1x400xf32>
    %3 = vector.shape_cast %2 : vector<1x1x400xf32> to vector<1x400xf32>
    %4 = vector.broadcast %3 : vector<1x400xf32> to vector<3x400xf32>
    %5 = arith.mulf %1, %4 : vector<3x400xf32>
    %c0_4 = arith.constant 0 : index
    %c0_5 = arith.constant 0 : index
    %6 = vector.load %arg9[%c0_4, %c0_5] : memref<8x400xf32, #tpu.memory_space<vmem>>, vector<3x400xf32>
    tpu.vector_store %arg9[%c0_4, %c0_5], %1 {strides = array<i32>} : memref<8x400xf32, #tpu.memory_space<vmem>>, vector<3x400xf32>,
    %c3_6 = arith.constant 3 : index
    %c0_7 = arith.constant 0 : index
    %7 = vector.load %arg9[%c3_6, %c0_7] : memref<8x400xf32, #tpu.memory_space<vmem>>, vector<1x400xf32>
    tpu.vector_store %arg9[%c3_6, %c0_7], %3 {strides = array<i32>} : memref<8x400xf32, #tpu.memory_space<vmem>>, vector<1x400xf32>,
    %c0_8 = arith.constant 0 : index
    %c0_9 = arith.constant 0 : index
    %8 = memref.load %arg2[%c0_8, %c0_9] : memref<3x3xf32, #tpu.memory_space<smem>>
    %9 = vector.extract_strided_slice %5 {offsets = [0, 0], sizes = [1, 400], strides = [1, 1]} : vector<3x400xf32> to vector<1x400xf32>
    %10 = vector.broadcast %8 : f32 to vector<1x400xf32>
    %11 = arith.mulf %10, %9 : vector<1x400xf32>
    %c0_10 = arith.constant 0 : index
    %c1 = arith.constant 1 : index
    %12 = memref.load %arg2[%c0_10, %c1] : memref<3x3xf32, #tpu.memory_space<smem>>
    %13 = vector.extract_strided_slice %5 {offsets = [1, 0], sizes = [1, 400], strides = [1, 1]} : vector<3x400xf32> to vector<1x400xf32>
    %14 = vector.broadcast %12 : f32 to vector<1x400xf32>
    %15 = arith.mulf %14, %13 : vector<1x400xf32>
    %16 = arith.addf %11, %15 : vector<1x400xf32>
    %c0_11 = arith.constant 0 : index
    %c2 = arith.constant 2 : index
    %17 = memref.load %arg2[%c0_11, %c2] : memref<3x3xf32, #tpu.memory_space<smem>>
    %18 = vector.extract_strided_slice %5 {offsets = [2, 0], sizes = [1, 400], strides = [1, 1]} : vector<3x400xf32> to vector<1x400xf32>
    %19 = vector.broadcast %17 : f32 to vector<1x400xf32>
    %20 = arith.mulf %19, %18 : vector<1x400xf32>
    %21 = arith.addf %16, %20 : vector<1x400xf32>
    %22 = vector.extract_strided_slice %1 {offsets = [0, 0], sizes = [1, 400], strides = [1, 1]} : vector<3x400xf32> to vector<1x400xf32>
    %23 = arith.mulf %3, %22 : vector<1x400xf32>
    %24 = arith.subf %21, %23 : vector<1x400xf32>
    %cst = arith.constant 5.000000e-01 : f32
    %25 = vector.broadcast %cst : f32 to vector<1x400xf32>
    %26 = arith.mulf %24, %25 : vector<1x400xf32>
    %27 = math.roundeven %26 : vector<1x400xf32>
    %28 = math.absf %27 : vector<1x400xf32>
    %cst_12 = arith.constant 1.000000e+00 : f32
    %29 = vector.broadcast %cst_12 : f32 to vector<1x400xf32>
    %30 = arith.cmpf ogt, %28, %29 : vector<1x400xf32>
    %cst_13 = arith.constant 0.000000e+00 : f32
    %31 = vector.broadcast %cst_13 : f32 to vector<1x400xf32>
    %32 = arith.select %30, %31, %27 : vector<1x400xi1>, vector<1x400xf32>
    %33 = vector.extract_strided_slice %1 {offsets = [0, 0], sizes = [1, 400], strides = [1, 1]} : vector<3x400xf32> to vector<1x400xf32>
    %cst_14 = arith.constant 2.000000e+00 : f32
    %34 = vector.broadcast %cst_14 : f32 to vector<1x400xf32>
    %35 = arith.mulf %34, %32 : vector<1x400xf32>
    %36 = arith.addf %33, %35 : vector<1x400xf32>
    %c4 = arith.constant 4 : index
    %c0_15 = arith.constant 0 : index
    %37 = vector.load %arg9[%c4, %c0_15] : memref<8x400xf32, #tpu.memory_space<vmem>>, vector<1x400xf32>
    tpu.vector_store %arg9[%c4, %c0_15], %36 {strides = array<i32>} : memref<8x400xf32, #tpu.memory_space<vmem>>, vector<1x400xf32>,
    %c1_16 = arith.constant 1 : index
    %c0_17 = arith.constant 0 : index
    %38 = memref.load %arg2[%c1_16, %c0_17] : memref<3x3xf32, #tpu.memory_space<smem>>
    %39 = vector.extract_strided_slice %5 {offsets = [0, 0], sizes = [1, 400], strides = [1, 1]} : vector<3x400xf32> to vector<1x400xf32>
    %40 = vector.broadcast %38 : f32 to vector<1x400xf32>
    %41 = arith.mulf %40, %39 : vector<1x400xf32>
    %c1_18 = arith.constant 1 : index
    %c1_19 = arith.constant 1 : index
    %42 = memref.load %arg2[%c1_18, %c1_19] : memref<3x3xf32, #tpu.memory_space<smem>>
    %43 = vector.extract_strided_slice %5 {offsets = [1, 0], sizes = [1, 400], strides = [1, 1]} : vector<3x400xf32> to vector<1x400xf32>
    %44 = vector.broadcast %42 : f32 to vector<1x400xf32>
    %45 = arith.mulf %44, %43 : vector<1x400xf32>
    %46 = arith.addf %41, %45 : vector<1x400xf32>
    %c1_20 = arith.constant 1 : index
    %c2_21 = arith.constant 2 : index
    %47 = memref.load %arg2[%c1_20, %c2_21] : memref<3x3xf32, #tpu.memory_space<smem>>
    %48 = vector.extract_strided_slice %5 {offsets = [2, 0], sizes = [1, 400], strides = [1, 1]} : vector<3x400xf32> to vector<1x400xf32>
    %49 = vector.broadcast %47 : f32 to vector<1x400xf32>
    %50 = arith.mulf %49, %48 : vector<1x400xf32>
    %51 = arith.addf %46, %50 : vector<1x400xf32>
    %52 = vector.extract_strided_slice %1 {offsets = [1, 0], sizes = [1, 400], strides = [1, 1]} : vector<3x400xf32> to vector<1x400xf32>
    %53 = arith.mulf %3, %52 : vector<1x400xf32>
    %54 = arith.subf %51, %53 : vector<1x400xf32>
    %cst_22 = arith.constant 5.000000e-01 : f32
    %55 = vector.broadcast %cst_22 : f32 to vector<1x400xf32>
    %56 = arith.mulf %54, %55 : vector<1x400xf32>
    %57 = math.roundeven %56 : vector<1x400xf32>
    %58 = math.absf %57 : vector<1x400xf32>
    %cst_23 = arith.constant 1.000000e+00 : f32
    %59 = vector.broadcast %cst_23 : f32 to vector<1x400xf32>
    %60 = arith.cmpf ogt, %58, %59 : vector<1x400xf32>
    %cst_24 = arith.constant 0.000000e+00 : f32
    %61 = vector.broadcast %cst_24 : f32 to vector<1x400xf32>
    %62 = arith.select %60, %61, %57 : vector<1x400xi1>, vector<1x400xf32>
    %63 = vector.extract_strided_slice %1 {offsets = [1, 0], sizes = [1, 400], strides = [1, 1]} : vector<3x400xf32> to vector<1x400xf32>
    %cst_25 = arith.constant 2.000000e+00 : f32
    %64 = vector.broadcast %cst_25 : f32 to vector<1x400xf32>
    %65 = arith.mulf %64, %62 : vector<1x400xf32>
    %66 = arith.addf %63, %65 : vector<1x400xf32>
    %c5 = arith.constant 5 : index
    %c0_26 = arith.constant 0 : index
    %67 = vector.load %arg9[%c5, %c0_26] : memref<8x400xf32, #tpu.memory_space<vmem>>, vector<1x400xf32>
    tpu.vector_store %arg9[%c5, %c0_26], %66 {strides = array<i32>} : memref<8x400xf32, #tpu.memory_space<vmem>>, vector<1x400xf32>,
    %c2_27 = arith.constant 2 : index
    %c0_28 = arith.constant 0 : index
    %68 = memref.load %arg2[%c2_27, %c0_28] : memref<3x3xf32, #tpu.memory_space<smem>>
    %69 = vector.extract_strided_slice %5 {offsets = [0, 0], sizes = [1, 400], strides = [1, 1]} : vector<3x400xf32> to vector<1x400xf32>
    %70 = vector.broadcast %68 : f32 to vector<1x400xf32>
    %71 = arith.mulf %70, %69 : vector<1x400xf32>
    %c2_29 = arith.constant 2 : index
    %c1_30 = arith.constant 1 : index
    %72 = memref.load %arg2[%c2_29, %c1_30] : memref<3x3xf32, #tpu.memory_space<smem>>
    %73 = vector.extract_strided_slice %5 {offsets = [1, 0], sizes = [1, 400], strides = [1, 1]} : vector<3x400xf32> to vector<1x400xf32>
    %74 = vector.broadcast %72 : f32 to vector<1x400xf32>
    %75 = arith.mulf %74, %73 : vector<1x400xf32>
    %76 = arith.addf %71, %75 : vector<1x400xf32>
    %c2_31 = arith.constant 2 : index
    %c2_32 = arith.constant 2 : index
    %77 = memref.load %arg2[%c2_31, %c2_32] : memref<3x3xf32, #tpu.memory_space<smem>>
    %78 = vector.extract_strided_slice %5 {offsets = [2, 0], sizes = [1, 400], strides = [1, 1]} : vector<3x400xf32> to vector<1x400xf32>
    %79 = vector.broadcast %77 : f32 to vector<1x400xf32>
    %80 = arith.mulf %79, %78 : vector<1x400xf32>
    %81 = arith.addf %76, %80 : vector<1x400xf32>
    %82 = vector.extract_strided_slice %1 {offsets = [2, 0], sizes = [1, 400], strides = [1, 1]} : vector<3x400xf32> to vector<1x400xf32>
    %83 = arith.mulf %3, %82 : vector<1x400xf32>
    %84 = arith.subf %81, %83 : vector<1x400xf32>
    %cst_33 = arith.constant 5.000000e-01 : f32
    %85 = vector.broadcast %cst_33 : f32 to vector<1x400xf32>
    %86 = arith.mulf %84, %85 : vector<1x400xf32>
    %87 = math.roundeven %86 : vector<1x400xf32>
    %88 = math.absf %87 : vector<1x400xf32>
    %cst_34 = arith.constant 1.000000e+00 : f32
    %89 = vector.broadcast %cst_34 : f32 to vector<1x400xf32>
    %90 = arith.cmpf ogt, %88, %89 : vector<1x400xf32>
    %cst_35 = arith.constant 0.000000e+00 : f32
    %91 = vector.broadcast %cst_35 : f32 to vector<1x400xf32>
    %92 = arith.select %90, %91, %87 : vector<1x400xi1>, vector<1x400xf32>
    %93 = vector.extract_strided_slice %1 {offsets = [2, 0], sizes = [1, 400], strides = [1, 1]} : vector<3x400xf32> to vector<1x400xf32>
    %cst_36 = arith.constant 2.000000e+00 : f32
    %94 = vector.broadcast %cst_36 : f32 to vector<1x400xf32>
    %95 = arith.mulf %94, %92 : vector<1x400xf32>
    %96 = arith.addf %93, %95 : vector<1x400xf32>
    %c6 = arith.constant 6 : index
    %c0_37 = arith.constant 0 : index
    %97 = vector.load %arg9[%c6, %c0_37] : memref<8x400xf32, #tpu.memory_space<vmem>>, vector<1x400xf32>
    tpu.vector_store %arg9[%c6, %c0_37], %96 {strides = array<i32>} : memref<8x400xf32, #tpu.memory_space<vmem>>, vector<1x400xf32>,
    %cst_38 = arith.constant 0.000000e+00 : f32
    %98 = vector.broadcast %cst_38 : f32 to vector<1x400xf32>
    %c7 = arith.constant 7 : index
    %c0_39 = arith.constant 0 : index
    %99 = vector.load %arg9[%c7, %c0_39] : memref<8x400xf32, #tpu.memory_space<vmem>>, vector<1x400xf32>
    tpu.vector_store %arg9[%c7, %c0_39], %98 {strides = array<i32>} : memref<8x400xf32, #tpu.memory_space<vmem>>, vector<1x400xf32>,
    %cst_40 = arith.constant 0.000000e+00 : f32
    %100 = vector.broadcast %cst_40 : f32 to vector<16x358xf32>
    %c0_41 = arith.constant 0 : index
    %c0_42 = arith.constant 0 : index
    %101 = vector.load %arg9[%c0_41, %c0_42] : memref<8x400xf32, #tpu.memory_space<vmem>>, vector<8x358xf32>
    %102 = arith.truncf %101 : vector<8x358xf32> to vector<8x358xbf16>
    %c0_43 = arith.constant 0 : index
    %c0_44 = arith.constant 0 : index
    %c0_45 = arith.constant 0 : index
    %103 = vector.load %arg3[%c0_43, %c0_44, %c0_45] : memref<9x16x8xbf16, #tpu.memory_space<vmem>>, vector<1x16x8xbf16>
    %104 = vector.shape_cast %103 : vector<1x16x8xbf16> to vector<16x8xbf16>
    %cst_46 = arith.constant dense<0.000000e+00> : vector<16x358xf32>
    %105 = tpu.matmul %104, %102, %cst_46 {dimension_numbers = #tpu.dot_dimension_numbers<[1], [0], [0], [1], [0, 0, 1, 1], [], []>} : vector<16x8xbf16>, vector<8x358xbf16>, vector<16x358xf32> -> vector<16x358xf32>
    %106 = arith.addf %100, %105 : vector<16x358xf32>
    %c0_47 = arith.constant 0 : index
    %c1_48 = arith.constant 1 : index
    %107 = vector.load %arg9[%c0_47, %c1_48] : memref<8x400xf32, #tpu.memory_space<vmem>>, vector<8x358xf32>
    %108 = arith.truncf %107 : vector<8x358xf32> to vector<8x358xbf16>
    %c1_49 = arith.constant 1 : index
    %c0_50 = arith.constant 0 : index
    %c0_51 = arith.constant 0 : index
    %109 = vector.load %arg3[%c1_49, %c0_50, %c0_51] : memref<9x16x8xbf16, #tpu.memory_space<vmem>>, vector<1x16x8xbf16>
    %110 = vector.shape_cast %109 : vector<1x16x8xbf16> to vector<16x8xbf16>
    %cst_52 = arith.constant dense<0.000000e+00> : vector<16x358xf32>
    %111 = tpu.matmul %110, %108, %cst_52 {dimension_numbers = #tpu.dot_dimension_numbers<[1], [0], [0], [1], [0, 0, 1, 1], [], []>} : vector<16x8xbf16>, vector<8x358xbf16>, vector<16x358xf32> -> vector<16x358xf32>
    %112 = arith.addf %106, %111 : vector<16x358xf32>
    %c0_53 = arith.constant 0 : index
    %c2_54 = arith.constant 2 : index
    %113 = vector.load %arg9[%c0_53, %c2_54] : memref<8x400xf32, #tpu.memory_space<vmem>>, vector<8x358xf32>
    %114 = arith.truncf %113 : vector<8x358xf32> to vector<8x358xbf16>
    %c2_55 = arith.constant 2 : index
    %c0_56 = arith.constant 0 : index
    %c0_57 = arith.constant 0 : index
    %115 = vector.load %arg3[%c2_55, %c0_56, %c0_57] : memref<9x16x8xbf16, #tpu.memory_space<vmem>>, vector<1x16x8xbf16>
    %116 = vector.shape_cast %115 : vector<1x16x8xbf16> to vector<16x8xbf16>
    %cst_58 = arith.constant dense<0.000000e+00> : vector<16x358xf32>
    %117 = tpu.matmul %116, %114, %cst_58 {dimension_numbers = #tpu.dot_dimension_numbers<[1], [0], [0], [1], [0, 0, 1, 1], [], []>} : vector<16x8xbf16>, vector<8x358xbf16>, vector<16x358xf32> -> vector<16x358xf32>
    %118 = arith.addf %112, %117 : vector<16x358xf32>
    %c0_59 = arith.constant 0 : index
    %c20 = arith.constant 20 : index
    %119 = vector.load %arg9[%c0_59, %c20] : memref<8x400xf32, #tpu.memory_space<vmem>>, vector<8x358xf32>
    %120 = arith.truncf %119 : vector<8x358xf32> to vector<8x358xbf16>
    %c3_60 = arith.constant 3 : index
    %c0_61 = arith.constant 0 : index
    %c0_62 = arith.constant 0 : index
    %121 = vector.load %arg3[%c3_60, %c0_61, %c0_62] : memref<9x16x8xbf16, #tpu.memory_space<vmem>>, vector<1x16x8xbf16>
    %122 = vector.shape_cast %121 : vector<1x16x8xbf16> to vector<16x8xbf16>
    %cst_63 = arith.constant dense<0.000000e+00> : vector<16x358xf32>
    %123 = tpu.matmul %122, %120, %cst_63 {dimension_numbers = #tpu.dot_dimension_numbers<[1], [0], [0], [1], [0, 0, 1, 1], [], []>} : vector<16x8xbf16>, vector<8x358xbf16>, vector<16x358xf32> -> vector<16x358xf32>
    %124 = arith.addf %118, %123 : vector<16x358xf32>
    %c0_64 = arith.constant 0 : index
    %c21 = arith.constant 21 : index
    %125 = vector.load %arg9[%c0_64, %c21] : memref<8x400xf32, #tpu.memory_space<vmem>>, vector<8x358xf32>
    %126 = arith.truncf %125 : vector<8x358xf32> to vector<8x358xbf16>
    %c4_65 = arith.constant 4 : index
    %c0_66 = arith.constant 0 : index
    %c0_67 = arith.constant 0 : index
    %127 = vector.load %arg3[%c4_65, %c0_66, %c0_67] : memref<9x16x8xbf16, #tpu.memory_space<vmem>>, vector<1x16x8xbf16>
    %128 = vector.shape_cast %127 : vector<1x16x8xbf16> to vector<16x8xbf16>
    %cst_68 = arith.constant dense<0.000000e+00> : vector<16x358xf32>
    %129 = tpu.matmul %128, %126, %cst_68 {dimension_numbers = #tpu.dot_dimension_numbers<[1], [0], [0], [1], [0, 0, 1, 1], [], []>} : vector<16x8xbf16>, vector<8x358xbf16>, vector<16x358xf32> -> vector<16x358xf32>
    %130 = arith.addf %124, %129 : vector<16x358xf32>
    %c0_69 = arith.constant 0 : index
    %c22 = arith.constant 22 : index
    %131 = vector.load %arg9[%c0_69, %c22] : memref<8x400xf32, #tpu.memory_space<vmem>>, vector<8x358xf32>
    %132 = arith.truncf %131 : vector<8x358xf32> to vector<8x358xbf16>
    %c5_70 = arith.constant 5 : index
    %c0_71 = arith.constant 0 : index
    %c0_72 = arith.constant 0 : index
    %133 = vector.load %arg3[%c5_70, %c0_71, %c0_72] : memref<9x16x8xbf16, #tpu.memory_space<vmem>>, vector<1x16x8xbf16>
    %134 = vector.shape_cast %133 : vector<1x16x8xbf16> to vector<16x8xbf16>
    %cst_73 = arith.constant dense<0.000000e+00> : vector<16x358xf32>
    %135 = tpu.matmul %134, %132, %cst_73 {dimension_numbers = #tpu.dot_dimension_numbers<[1], [0], [0], [1], [0, 0, 1, 1], [], []>} : vector<16x8xbf16>, vector<8x358xbf16>, vector<16x358xf32> -> vector<16x358xf32>
    %136 = arith.addf %130, %135 : vector<16x358xf32>
    %c0_74 = arith.constant 0 : index
    %c40 = arith.constant 40 : index
    %137 = vector.load %arg9[%c0_74, %c40] : memref<8x400xf32, #tpu.memory_space<vmem>>, vector<8x358xf32>
    %138 = arith.truncf %137 : vector<8x358xf32> to vector<8x358xbf16>
    %c6_75 = arith.constant 6 : index
    %c0_76 = arith.constant 0 : index
    %c0_77 = arith.constant 0 : index
    %139 = vector.load %arg3[%c6_75, %c0_76, %c0_77] : memref<9x16x8xbf16, #tpu.memory_space<vmem>>, vector<1x16x8xbf16>
    %140 = vector.shape_cast %139 : vector<1x16x8xbf16> to vector<16x8xbf16>
    %cst_78 = arith.constant dense<0.000000e+00> : vector<16x358xf32>
    %141 = tpu.matmul %140, %138, %cst_78 {dimension_numbers = #tpu.dot_dimension_numbers<[1], [0], [0], [1], [0, 0, 1, 1], [], []>} : vector<16x8xbf16>, vector<8x358xbf16>, vector<16x358xf32> -> vector<16x358xf32>
    %142 = arith.addf %136, %141 : vector<16x358xf32>
    %c0_79 = arith.constant 0 : index
    %c41 = arith.constant 41 : index
    %143 = vector.load %arg9[%c0_79, %c41] : memref<8x400xf32, #tpu.memory_space<vmem>>, vector<8x358xf32>
    %144 = arith.truncf %143 : vector<8x358xf32> to vector<8x358xbf16>
    %c7_80 = arith.constant 7 : index
    %c0_81 = arith.constant 0 : index
    %c0_82 = arith.constant 0 : index
    %145 = vector.load %arg3[%c7_80, %c0_81, %c0_82] : memref<9x16x8xbf16, #tpu.memory_space<vmem>>, vector<1x16x8xbf16>
    %146 = vector.shape_cast %145 : vector<1x16x8xbf16> to vector<16x8xbf16>
    %cst_83 = arith.constant dense<0.000000e+00> : vector<16x358xf32>
    %147 = tpu.matmul %146, %144, %cst_83 {dimension_numbers = #tpu.dot_dimension_numbers<[1], [0], [0], [1], [0, 0, 1, 1], [], []>} : vector<16x8xbf16>, vector<8x358xbf16>, vector<16x358xf32> -> vector<16x358xf32>
    %148 = arith.addf %142, %147 : vector<16x358xf32>
    %c0_84 = arith.constant 0 : index
    %c42 = arith.constant 42 : index
    %149 = vector.load %arg9[%c0_84, %c42] : memref<8x400xf32, #tpu.memory_space<vmem>>, vector<8x358xf32>
    %150 = arith.truncf %149 : vector<8x358xf32> to vector<8x358xbf16>
    %c8 = arith.constant 8 : index
    %c0_85 = arith.constant 0 : index
    %c0_86 = arith.constant 0 : index
    %151 = vector.load %arg3[%c8, %c0_85, %c0_86] : memref<9x16x8xbf16, #tpu.memory_space<vmem>>, vector<1x16x8xbf16>
    %152 = vector.shape_cast %151 : vector<1x16x8xbf16> to vector<16x8xbf16>
    %cst_87 = arith.constant dense<0.000000e+00> : vector<16x358xf32>
    %153 = tpu.matmul %152, %150, %cst_87 {dimension_numbers = #tpu.dot_dimension_numbers<[1], [0], [0], [1], [0, 0, 1, 1], [], []>} : vector<16x8xbf16>, vector<8x358xbf16>, vector<16x358xf32> -> vector<16x358xf32>
    %154 = arith.addf %148, %153 : vector<16x358xf32>
    %c0_88 = arith.constant 0 : index
    %c0_89 = arith.constant 0 : index
    %155 = vector.load %arg4[%c0_88, %c0_89] : memref<16x1xf32, #tpu.memory_space<vmem>>, vector<16x1xf32>
    %156 = vector.broadcast %155 : vector<16x1xf32> to vector<16x358xf32>
    %157 = arith.addf %154, %156 : vector<16x358xf32>
    %cst_90 = arith.constant 0.000000e+00 : f32
    %158 = vector.broadcast %cst_90 : f32 to vector<16x358xf32>
    %159 = arith.maximumf %157, %158 : vector<16x358xf32>
    %c0_91 = arith.constant 0 : index
    %c0_92 = arith.constant 0 : index
    %160 = vector.load %arg7[%c0_91, %c0_92] : memref<1x358xf32, #tpu.memory_space<vmem>>, vector<1x358xf32>
    %161 = vector.broadcast %160 : vector<1x358xf32> to vector<16x358xf32>
    %162 = arith.mulf %159, %161 : vector<16x358xf32>
    %163 = arith.truncf %162 : vector<16x358xf32> to vector<16x358xbf16>
    %c0_93 = arith.constant 0 : index
    %c0_94 = arith.constant 0 : index
    %164 = vector.load %arg10[%c0_93, %c0_94] : memref<16x358xbf16, #tpu.memory_space<vmem>>, vector<16x358xbf16>
    tpu.vector_store %arg10[%c0_93, %c0_94], %163 {strides = array<i32>} : memref<16x358xbf16, #tpu.memory_space<vmem>>, vector<16x358xbf16>,
    %cst_95 = arith.constant 0.000000e+00 : f32
    %165 = vector.broadcast %cst_95 : f32 to vector<3x316xf32>
    %c0_96 = arith.constant 0 : index
    %c0_97 = arith.constant 0 : index
    %166 = vector.load %arg10[%c0_96, %c0_97] : memref<16x358xbf16, #tpu.memory_space<vmem>>, vector<16x316xbf16>
    %c0_98 = arith.constant 0 : index
    %c0_99 = arith.constant 0 : index
    %c0_100 = arith.constant 0 : index
    %167 = vector.load %arg5[%c0_98, %c0_99, %c0_100] : memref<9x3x16xbf16, #tpu.memory_space<vmem>>, vector<1x3x16xbf16>
    %168 = vector.shape_cast %167 : vector<1x3x16xbf16> to vector<3x16xbf16>
    %cst_101 = arith.constant dense<0.000000e+00> : vector<3x316xf32>
    %169 = tpu.matmul %168, %166, %cst_101 {dimension_numbers = #tpu.dot_dimension_numbers<[1], [0], [0], [1], [0, 0, 1, 1], [], []>} : vector<3x16xbf16>, vector<16x316xbf16>, vector<3x316xf32> -> vector<3x316xf32>
    %170 = arith.addf %165, %169 : vector<3x316xf32>
    %c0_102 = arith.constant 0 : index
    %c1_103 = arith.constant 1 : index
    %171 = vector.load %arg10[%c0_102, %c1_103] : memref<16x358xbf16, #tpu.memory_space<vmem>>, vector<16x316xbf16>
    %c1_104 = arith.constant 1 : index
    %c0_105 = arith.constant 0 : index
    %c0_106 = arith.constant 0 : index
    %172 = vector.load %arg5[%c1_104, %c0_105, %c0_106] : memref<9x3x16xbf16, #tpu.memory_space<vmem>>, vector<1x3x16xbf16>
    %173 = vector.shape_cast %172 : vector<1x3x16xbf16> to vector<3x16xbf16>
    %cst_107 = arith.constant dense<0.000000e+00> : vector<3x316xf32>
    %174 = tpu.matmul %173, %171, %cst_107 {dimension_numbers = #tpu.dot_dimension_numbers<[1], [0], [0], [1], [0, 0, 1, 1], [], []>} : vector<3x16xbf16>, vector<16x316xbf16>, vector<3x316xf32> -> vector<3x316xf32>
    %175 = arith.addf %170, %174 : vector<3x316xf32>
    %c0_108 = arith.constant 0 : index
    %c2_109 = arith.constant 2 : index
    %176 = vector.load %arg10[%c0_108, %c2_109] : memref<16x358xbf16, #tpu.memory_space<vmem>>, vector<16x316xbf16>
    %c2_110 = arith.constant 2 : index
    %c0_111 = arith.constant 0 : index
    %c0_112 = arith.constant 0 : index
    %177 = vector.load %arg5[%c2_110, %c0_111, %c0_112] : memref<9x3x16xbf16, #tpu.memory_space<vmem>>, vector<1x3x16xbf16>
    %178 = vector.shape_cast %177 : vector<1x3x16xbf16> to vector<3x16xbf16>
    %cst_113 = arith.constant dense<0.000000e+00> : vector<3x316xf32>
    %179 = tpu.matmul %178, %176, %cst_113 {dimension_numbers = #tpu.dot_dimension_numbers<[1], [0], [0], [1], [0, 0, 1, 1], [], []>} : vector<3x16xbf16>, vector<16x316xbf16>, vector<3x316xf32> -> vector<3x316xf32>
    %180 = arith.addf %175, %179 : vector<3x316xf32>
    %c0_114 = arith.constant 0 : index
    %c20_115 = arith.constant 20 : index
    %181 = vector.load %arg10[%c0_114, %c20_115] : memref<16x358xbf16, #tpu.memory_space<vmem>>, vector<16x316xbf16>
    %c3_116 = arith.constant 3 : index
    %c0_117 = arith.constant 0 : index
    %c0_118 = arith.constant 0 : index
    %182 = vector.load %arg5[%c3_116, %c0_117, %c0_118] : memref<9x3x16xbf16, #tpu.memory_space<vmem>>, vector<1x3x16xbf16>
    %183 = vector.shape_cast %182 : vector<1x3x16xbf16> to vector<3x16xbf16>
    %cst_119 = arith.constant dense<0.000000e+00> : vector<3x316xf32>
    %184 = tpu.matmul %183, %181, %cst_119 {dimension_numbers = #tpu.dot_dimension_numbers<[1], [0], [0], [1], [0, 0, 1, 1], [], []>} : vector<3x16xbf16>, vector<16x316xbf16>, vector<3x316xf32> -> vector<3x316xf32>
    %185 = arith.addf %180, %184 : vector<3x316xf32>
    %c0_120 = arith.constant 0 : index
    %c21_121 = arith.constant 21 : index
    %186 = vector.load %arg10[%c0_120, %c21_121] : memref<16x358xbf16, #tpu.memory_space<vmem>>, vector<16x316xbf16>
    %c4_122 = arith.constant 4 : index
    %c0_123 = arith.constant 0 : index
    %c0_124 = arith.constant 0 : index
    %187 = vector.load %arg5[%c4_122, %c0_123, %c0_124] : memref<9x3x16xbf16, #tpu.memory_space<vmem>>, vector<1x3x16xbf16>
    %188 = vector.shape_cast %187 : vector<1x3x16xbf16> to vector<3x16xbf16>
    %cst_125 = arith.constant dense<0.000000e+00> : vector<3x316xf32>
    %189 = tpu.matmul %188, %186, %cst_125 {dimension_numbers = #tpu.dot_dimension_numbers<[1], [0], [0], [1], [0, 0, 1, 1], [], []>} : vector<3x16xbf16>, vector<16x316xbf16>, vector<3x316xf32> -> vector<3x316xf32>
    %190 = arith.addf %185, %189 : vector<3x316xf32>
    %c0_126 = arith.constant 0 : index
    %c22_127 = arith.constant 22 : index
    %191 = vector.load %arg10[%c0_126, %c22_127] : memref<16x358xbf16, #tpu.memory_space<vmem>>, vector<16x316xbf16>
    %c5_128 = arith.constant 5 : index
    %c0_129 = arith.constant 0 : index
    %c0_130 = arith.constant 0 : index
    %192 = vector.load %arg5[%c5_128, %c0_129, %c0_130] : memref<9x3x16xbf16, #tpu.memory_space<vmem>>, vector<1x3x16xbf16>
    %193 = vector.shape_cast %192 : vector<1x3x16xbf16> to vector<3x16xbf16>
    %cst_131 = arith.constant dense<0.000000e+00> : vector<3x316xf32>
    %194 = tpu.matmul %193, %191, %cst_131 {dimension_numbers = #tpu.dot_dimension_numbers<[1], [0], [0], [1], [0, 0, 1, 1], [], []>} : vector<3x16xbf16>, vector<16x316xbf16>, vector<3x316xf32> -> vector<3x316xf32>
    %195 = arith.addf %190, %194 : vector<3x316xf32>
    %c0_132 = arith.constant 0 : index
    %c40_133 = arith.constant 40 : index
    %196 = vector.load %arg10[%c0_132, %c40_133] : memref<16x358xbf16, #tpu.memory_space<vmem>>, vector<16x316xbf16>
    %c6_134 = arith.constant 6 : index
    %c0_135 = arith.constant 0 : index
    %c0_136 = arith.constant 0 : index
    %197 = vector.load %arg5[%c6_134, %c0_135, %c0_136] : memref<9x3x16xbf16, #tpu.memory_space<vmem>>, vector<1x3x16xbf16>
    %198 = vector.shape_cast %197 : vector<1x3x16xbf16> to vector<3x16xbf16>
    %cst_137 = arith.constant dense<0.000000e+00> : vector<3x316xf32>
    %199 = tpu.matmul %198, %196, %cst_137 {dimension_numbers = #tpu.dot_dimension_numbers<[1], [0], [0], [1], [0, 0, 1, 1], [], []>} : vector<3x16xbf16>, vector<16x316xbf16>, vector<3x316xf32> -> vector<3x316xf32>
    %200 = arith.addf %195, %199 : vector<3x316xf32>
    %c0_138 = arith.constant 0 : index
    %c41_139 = arith.constant 41 : index
    %201 = vector.load %arg10[%c0_138, %c41_139] : memref<16x358xbf16, #tpu.memory_space<vmem>>, vector<16x316xbf16>
    %c7_140 = arith.constant 7 : index
    %c0_141 = arith.constant 0 : index
    %c0_142 = arith.constant 0 : index
    %202 = vector.load %arg5[%c7_140, %c0_141, %c0_142] : memref<9x3x16xbf16, #tpu.memory_space<vmem>>, vector<1x3x16xbf16>
    %203 = vector.shape_cast %202 : vector<1x3x16xbf16> to vector<3x16xbf16>
    %cst_143 = arith.constant dense<0.000000e+00> : vector<3x316xf32>
    %204 = tpu.matmul %203, %201, %cst_143 {dimension_numbers = #tpu.dot_dimension_numbers<[1], [0], [0], [1], [0, 0, 1, 1], [], []>} : vector<3x16xbf16>, vector<16x316xbf16>, vector<3x316xf32> -> vector<3x316xf32>
    %205 = arith.addf %200, %204 : vector<3x316xf32>
    %c0_144 = arith.constant 0 : index
    %c42_145 = arith.constant 42 : index
    %206 = vector.load %arg10[%c0_144, %c42_145] : memref<16x358xbf16, #tpu.memory_space<vmem>>, vector<16x316xbf16>
    %c8_146 = arith.constant 8 : index
    %c0_147 = arith.constant 0 : index
    %c0_148 = arith.constant 0 : index
    %207 = vector.load %arg5[%c8_146, %c0_147, %c0_148] : memref<9x3x16xbf16, #tpu.memory_space<vmem>>, vector<1x3x16xbf16>
    %208 = vector.shape_cast %207 : vector<1x3x16xbf16> to vector<3x16xbf16>
    %cst_149 = arith.constant dense<0.000000e+00> : vector<3x316xf32>
    %209 = tpu.matmul %208, %206, %cst_149 {dimension_numbers = #tpu.dot_dimension_numbers<[1], [0], [0], [1], [0, 0, 1, 1], [], []>} : vector<3x16xbf16>, vector<16x316xbf16>, vector<3x316xf32> -> vector<3x316xf32>
    %210 = arith.addf %205, %209 : vector<3x316xf32>
    %c0_150 = arith.constant 0 : index
    %c0_151 = arith.constant 0 : index
    %211 = vector.load %arg6[%c0_150, %c0_151] : memref<3x1xf32, #tpu.memory_space<vmem>>, vector<3x1xf32>
    %212 = vector.broadcast %211 : vector<3x1xf32> to vector<3x316xf32>
    %213 = arith.addf %210, %212 : vector<3x316xf32>
    %c0_152 = arith.constant 0 : index
    %c0_153 = arith.constant 0 : index
    %c0_154 = arith.constant 0 : index
    %214 = vector.load %arg8[%c0_152, %c0_153, %c0_154] : memref<1x3x316xf32, #tpu.memory_space<vmem>>, vector<1x3x316xf32>
    %215 = vector.shape_cast %214 : vector<1x3x316xf32> to vector<3x316xf32>
    %216 = vector.shape_cast %213 : vector<3x316xf32> to vector<1x3x316xf32>
    tpu.vector_store %arg8[%c0_152, %c0_153, %c0_154], %216 {strides = array<i32>} : memref<1x3x316xf32, #tpu.memory_space<vmem>>, vector<1x3x316xf32>,
    return
  }
  func.func @transform_0(%arg0: i32) -> (i32, i32, i32) {
    %c0_i32 = arith.constant 0 : i32
    %c0_i32_0 = arith.constant 0 : i32
    %c0_i32_1 = arith.constant 0 : i32
    return %arg0, %c0_i32, %c0_i32_0 : i32, i32, i32
  }
  func.func @transform_1(%arg0: i32) -> (i32, i32) {
    %c0_i32 = arith.constant 0 : i32
    %c0_i32_0 = arith.constant 0 : i32
    %c0_i32_1 = arith.constant 0 : i32
    return %c0_i32, %c0_i32_0 : i32, i32
  }
  func.func @transform_2(%arg0: i32) -> (i32, i32, i32) {
    %c0_i32 = arith.constant 0 : i32
    %c0_i32_0 = arith.constant 0 : i32
    %c0_i32_1 = arith.constant 0 : i32
    %c0_i32_2 = arith.constant 0 : i32
    return %c0_i32, %c0_i32_0, %c0_i32_1 : i32, i32, i32
  }
  func.func @transform_3(%arg0: i32) -> (i32, i32) {
    %c0_i32 = arith.constant 0 : i32
    %c0_i32_0 = arith.constant 0 : i32
    %c0_i32_1 = arith.constant 0 : i32
    return %c0_i32, %c0_i32_0 : i32, i32
  }
  func.func @transform_4(%arg0: i32) -> (i32, i32, i32) {
    %c0_i32 = arith.constant 0 : i32
    %c0_i32_0 = arith.constant 0 : i32
    %c0_i32_1 = arith.constant 0 : i32
    %c0_i32_2 = arith.constant 0 : i32
    return %c0_i32, %c0_i32_0, %c0_i32_1 : i32, i32, i32
  }
  func.func @transform_5(%arg0: i32) -> (i32, i32) {
    %c0_i32 = arith.constant 0 : i32
    %c0_i32_0 = arith.constant 0 : i32
    %c0_i32_1 = arith.constant 0 : i32
    return %c0_i32, %c0_i32_0 : i32, i32
  }
  func.func @transform_6(%arg0: i32) -> (i32, i32) {
    %c0_i32 = arith.constant 0 : i32
    %c0_i32_0 = arith.constant 0 : i32
    %c0_i32_1 = arith.constant 0 : i32
    return %c0_i32, %c0_i32_0 : i32, i32
  }
  func.func @transform_7(%arg0: i32) -> (i32, i32, i32) {
    %c0_i32 = arith.constant 0 : i32
    %c0_i32_0 = arith.constant 0 : i32
    %c0_i32_1 = arith.constant 0 : i32
    return %arg0, %c0_i32, %c0_i32_0 : i32, i32, i32
  }
}

</mosaic_0001>

<bundles_post_ra>
// kernel: spyrit_net_forward.1
= control target key start
LH: loop header
LB: loop body
LE: loop exit
PB: predicated region body
PF: predicated region fallthrough
CT: control target
= control target key end

     0   :  { %12 = vsyncpa [#allocation5], 0  ;;  %s3199_s24 = smov 0   ;;  %s3669_s0 = inlined_call_operand.vmem [shape: f32[2,4,400], index: 0, kind: input, shape index: {}]   ;;  %s3670_s1 = inlined_call_operand.vmem [shape: f32[3,3], index: 1, kind: input, shape index: {}]   ;;  %s3671_s2 = inlined_call_operand.vmem [shape: bf16[9,16,8], index: 2, kind: input, shape index: {}]   ;;  %s3672_s3 = inlined_call_operand.vmem [shape: f32[16,1], index: 3, kind: input, shape index: {}]   ;;  %s3673_s4 = inlined_call_operand.vmem [shape: bf16[9,3,16], index: 4, kind: input, shape index: {}]   ;;  %s3674_s5 = inlined_call_operand.vmem [shape: f32[3,1], index: 5, kind: input, shape index: {}]   ;;  %s3675_s6 = inlined_call_operand.vmem [shape: f32[1,358], index: 6, kind: input, shape index: {}]   ;;  %s3676_s7 = inlined_call_operand.vmem [shape: f32[2,3,316], index: 7, kind: output, shape index: {}]  }
   0x1 LB: > { %s3205_s25 = sadd.s32 4294967295, %s3142_s24   ;;  %p2780_p0 = scmp.ge.s32.totalorder %s3142_s24, 1  ;;  %s3142_s24 = sphi %s3199_s24, %s18_s24  }
   0x2   : > { %p201_p1 = scmp.lt.s32.totalorder %s3142_s24, 3  ;;  %s214_s28 = sshll.u32 %s3670_s1, 4  ;;  %s215_s28 = int_to_ptr.vmem [resolvable:$true] %s214_s28 }
   0x3   : > { %p3081_p3 = scmp.eq.s32.totalorder %s3205_s25, 0  ;;  %s3117_s30 = scalar_lea.vmem %s215_s28, 64 }
   0x4   : > { %p3212_p2 = pnand %p2780_p0, %p201_p1  ;;  %p3118_p6 = scmp.ne.s32.totalorder %s215_s28, %s3117_s30 }
   0x5   : > { %p3125_p10 = scmp.lt.s32.totalorder %s215_s28, %s215_s28  ;;  %p3126_p11 = scmp.lt.s32.totalorder %s3117_s30, %s3117_s30 }
   0x6   : > { %p3077_p4 = pneg %p3212_p2 }
   0x7   : > { %p3127_p12 = por %p3126_p11, %p3125_p10 }
   0x8   : > { %p3078_p5 = pnand %p3081_p3, %p3077_p4 }
   0xa   : > { %p3119_p7 = pneg %p3078_p5 }
   0xc   : > { %p3120_p8 = pnand %p3119_p7, %p3118_p6 }
   0xe   : > { %p3121_p9 = pneg %p3120_p8 }
  0x10   : > { %p3128_p13 = pnand %p3127_p12, %p3121_p9 }
  0x12   : > { %3131 = shalt.err (!%p3128_p13)
}
  0x13   : > { %s3144_s8 = smov [#allocation4]   ;;  %250 = sbr.rel (%p3212_p2) target bundleno = 947 (0x3b3), region = 48 }
  0x14   : > { %3080 = dma.vmem_to_smem (!%p3078_p5), %s215_s28, 64, %s3144_s8, [#allocation5]  }
  0x1a   : > { %3137 = dma.done.wait (%p3081_p3), [#allocation5], 64  }
  0x1b   : > { %3139 = vsyncadd (%p3081_p3), [#allocation5], 4294967232 }
  0x1c   : > { %256 = sfence }
  0x1d   : > { %p283_p0 = scmp.lt.s32.totalorder %s3205_s25, 1  ;;  %v299_v0 = vlaneseq  ;;  %s3228_s9 = sld [smem:[#allocation4]]  ;;  %v3145_v1 = vmov 1966171168   ;;  %v3146_v3 = vmov 286326784   ;;  %v3148_v10 = vmov 0.0  }
  0x1e   : > { %s3230_s10 = sld [smem:[#allocation4 + $0x1]]  ;;  %s3232_s11 = sld [smem:[#allocation4 + $0x2]]  ;;  %v372_v2 = vunpack.c.l.s4 %v3145_v1  ;;  %v397_v4 = vunpack.c.l.s4 %v3146_v3  ;;  %v3147_v7 = vmov 858989090   ;;  %vm330_vm1 = vcmask 124928   ;;  %2926 = vmatprep.subr.bf16.mxu1 %v3148_v10 }
  0x1f   : > { %s3681_s25 = smov (!%p283_p0, %s3205_s25), 1  ;;  %v3237_v5 = vshrl.u32 %v299_v0, 7  ;;  %vm3239_vm0 = vcmp.lt.s32.totalorder %v299_v0, 400  ;;  %v404_v8 = vunpack.c.l.s4 %v3147_v7  ;;  %s3243_s12 = sld [smem:[#allocation4 + $0x80]]  ;;  %vm3149_vm8 = vmmov 0  }
  0x20   : > { %v373_v9 = vunpack.c.0.s8 %v372_v2  ;;  %s3245_s13 = sld [smem:[#allocation4 + $0x81]]  ;;  %669 = vst.msk [vmem:[#allocation2 + $0x7] ss:$8 sm:$0xf] %vm3239_vm0, %v3148_v10  ;;  %s2889_s14 = sshll.u32 %s3681_s25, 4  ;;  %v398_v16 = vunpack.c.0.s8 %v397_v4  ;;  %2928 = vmatprep.mubr.msk.bf16.mxu1 %vm3149_vm8, %v3148_v10  ;;  %vm703_vm9 = vcmask 1043456  }
  0x21   : > { %v301_v11 = vsub.s32 0, %v3237_v5  ;;  %v305_v12 = vsub.s32 1, %v3237_v5  ;;  %v309_v13 = vsub.s32 2, %v3237_v5  ;;  %v313_v14 = vsub.s32 3, %v3237_v5  ;;  %s287_s17 = scalar_lea.vmem %s3669_s0, %s2889_s14  ;;  %s3262_s18 = sld [smem:[#allocation4 + $0x82]] }
  0x22   : > { %v3260_v15 = vsub.s32 %v373_v9, %v3237_v5  ;;  %v3264_v17 = vld [vmem:[%s287_s17] sm:$0x77]  ;;  %v3266_v18 = vld [vmem:[%s287_s17 + $0x8] sm:$0x77]  ;;  %v405_v19 = vunpack.c.0.s8 %v404_v8  ;;  %s3268_s19 = sld [smem:[#allocation4 + $0x100]]  ;;  %s3279_s20 = sld [smem:[#allocation4 + $0x101]]  ;;  %v3297_v31 = vsub.s32 %v398_v16, %v3237_v5 }
  0x23   : > { %v3270_v20 = vld [vmem:[%s287_s17 + $0x3] ss:$4 sm:$0xf]  ;;  %329 = vst [vmem:[#allocation2 + $0x10] sm:$0x7] %v3266_v18  ;;  %v340_v21 = vstv %s3228_s9  ;;  %v323_v36 = vcombine.high %v3264_v17, %v3264_v17  ;;  %v324_v40 = vcombine.high %v3266_v18, %v3266_v18  ;;  %s3324_s21 = sld [smem:[#allocation4 + $0x102]] }
  0x24   : > { %v344_v22 = vstv %s3230_s10  ;;  %v377_v23 = vrot.slane %v3264_v17, %v3260_v15  ;;  %v384_v24 = vrot.slane %v3266_v18, %v3260_v15  ;;  %327 = vst [vmem:[#allocation2] sm:$0x7] %v3264_v17  ;;  %v302_v25 = vrot.slane %v3270_v20, %v301_v11  ;;  %337 = vst.msk [vmem:[#allocation2 + $0x3] ss:$8 sm:$0xf] %vm3239_vm0, %v3270_v20  ;;  %s3151_s22 = smov 127  }
  0x25   : > { %v306_v26 = vrot.slane %v3270_v20, %v305_v12  ;;  %v310_v27 = vrot.slane %v3270_v20, %v309_v13  ;;  %v314_v28 = vrot.slane %v3270_v20, %v313_v14  ;;  %v358_v29 = vstv %s3232_s11  ;;  %328 = vst [vmem:[#allocation2 + $0x8] sm:$0x7] %v323_v36  ;;  %331 = vst.msk [vmem:[#allocation2 + $0x18] sm:$0x7] %vm330_vm1, %v324_v40  ;;  %s3152_s23 = smov 126   ;;  %s3153_s26 = smov 108  }
  0x26   : > { %v385_v30 = vcombine.low %v377_v23, %v384_v24  ;;  %v457_v32 = vstv %s3243_s12  ;;  %v488_v35 = vcombine.high %v377_v23, %v384_v24  ;;  %v461_v38 = vstv %s3245_s13  ;;  %s3154_s27 = smov 107   ;;  %s3155_s28 = smov 106  }
  0x27   : > { %v315_v33 = vcombine.low %v302_v25, %v306_v26  ;;  %v316_v34 = vcombine.low %v310_v27, %v314_v28  ;;  %v475_v39 = vstv %s3262_s18  ;;  %v3312_v43 = vsub.s32 %v405_v19, %v3237_v5  ;;  %s3156_s29 = smov 88   ;;  %s3157_s30 = smov 87   ;;  %v2695_v5 = vld [vmem:[%s3674_s5] sm:$0x7] }
  0x28   : > { %v3303_v37 = vrot.slane %v385_v30, %v3260_v15  ;;  %v566_v44 = vstv %s3268_s19  ;;  %v495_v46 = vrot.slane %v488_v35, %v3260_v15  ;;  %v570_v47 = vstv %s3279_s20  ;;  %s3158_s8 = smov 86   ;;  %s3066_s19 = smul.u32 12, %s3681_s25 }
  0x29   : > { %v319_v41 = vmul.f32 %v315_v33, %v3264_v17  ;;  %v320_v42 = vmul.f32 %v316_v34, %v3266_v18  ;;  %v584_v35 = vstv %s3324_s21  ;;  %vm699_vm10 = vcmask 64512  }
  0x2a   : > { %v394_v45 = vmul.f32 %v3270_v20, %v3303_v37  ;;  %v597_v48 = vcombine.high %v3303_v37, %v3303_v37  ;;  %v497_v9 = vmul.f32 %v3270_v20, %v495_v46  ;;  %vm696_vm11 = vcmask 1039360  }
  0x2b   : > { %v341_v49 = vmul.f32 %v340_v21, %v319_v41  ;;  %v342_v50 = vmul.f32 %v340_v21, %v320_v42  ;;  %v345_v51 = vmul.f32 %v344_v22, %v319_v41  ;;  %v346_v52 = vmul.f32 %v344_v22, %v320_v42 }
  0x2c   : > { %v359_v53 = vmul.f32 %v358_v29, %v319_v41  ;;  %v360_v54 = vmul.f32 %v358_v29, %v320_v42  ;;  %v402_v55 = vrot.slane %v394_v45, %v3297_v31  ;;  %v409_v56 = vrot.slane %v394_v45, %v3312_v43 }
  0x2d   : > { %v2790_v57 = vrot.slane %v345_v51, 9  ;;  %v2791_v58 = vrot.slane %v346_v52, 9  ;;  %v458_v59 = vmul.f32 %v457_v32, %v319_v41  ;;  %v459_v60 = vmul.f32 %v457_v32, %v320_v42 }
  0x2e   : > { %v2793_v61 = vrot.slane %v359_v53, 10  ;;  %v2794_v62 = vrot.slane %v360_v54, 10  ;;  %v462_v63 = vmul.f32 %v461_v38, %v319_v41  ;;  %v463_v0 = vmul.f32 %v461_v38, %v320_v42 }
  0x2f   : > { %v355_v1 = vadd.f32 %v2790_v57, %v341_v49  ;;  %v356_v2 = vadd.f32 %v2791_v58, %v342_v50  ;;  %v476_v3 = vmul.f32 %v475_v39, %v319_v41  ;;  %v477_v4 = vmul.f32 %v475_v39, %v320_v42 }
  0x30   : > { %v2797_v7 = vrot.slane %v462_v63, 9  ;;  %v2798_v8 = vrot.slane %v463_v0, 9  ;;  %v567_v14 = vmul.f32 %v566_v44, %v319_v41  ;;  %v505_v25 = vrot.slane %v497_v9, %v3297_v31 }
  0x31   : > { %v369_v16 = vadd.f32 %v2793_v61, %v355_v1  ;;  %v370_v19 = vadd.f32 %v2794_v62, %v356_v2  ;;  %v2800_v21 = vrot.slane %v476_v3, 10  ;;  %v2801_v22 = vrot.slane %v477_v4, 10 }
  0x32   : > { %v472_v23 = vadd.f32 %v2797_v7, %v458_v59  ;;  %v473_v24 = vadd.f32 %v2798_v8, %v459_v60  ;;  %v512_v26 = vrot.slane %v497_v9, %v3312_v43  ;;  %v568_v29 = vmul.f32 %v566_v44, %v320_v42 }
  0x33   : > { %v412_v27 = vsub.f32 %v369_v16, %v402_v55  ;;  %v413_v28 = vsub.f32 %v370_v19, %v409_v56  ;;  %v571_v30 = vmul.f32 %v570_v47, %v319_v41  ;;  %v572_v34 = vmul.f32 %v570_v47, %v320_v42 }
  0x34   : > { %v486_v32 = vadd.f32 %v2800_v21, %v472_v23  ;;  %v487_v33 = vadd.f32 %v2801_v22, %v473_v24  ;;  %v585_v39 = vmul.f32 %v584_v35, %v319_v41  ;;  %v586_v49 = vmul.f32 %v584_v35, %v320_v42 }
  0x35   : > { %v414_v36 = vmul.f32 0.5, %v412_v27  ;;  %v415_v37 = vmul.f32 0.5, %v413_v28  ;;  %v2804_v38 = vrot.slane %v571_v30, 9  ;;  %v2805_v46 = vrot.slane %v572_v34, 9 }
  0x36   : > { %v515_v40 = vsub.f32 %v486_v32, %v505_v25  ;;  %v516_v45 = vsub.f32 %v487_v33, %v512_v26  ;;  %v2807_v53 = vrot.slane %v585_v39, 10  ;;  %v2808_v56 = vrot.slane %v586_v49, 10 }
  0x37   : > { %v3067_v50 = vround.rtne.f32 %v414_v36  ;;  %v3068_v51 = vround.rtne.f32 %v415_v37  ;;  %v581_v52 = vadd.f32 %v2804_v38, %v567_v14  ;;  %v582_v44 = vadd.f32 %v2805_v46, %v568_v29 }
  0x38   : > { %v517_v54 = vmul.f32 0.5, %v515_v40  ;;  %v518_v55 = vmul.f32 0.5, %v516_v45  ;;  %v599_v59 = vmul.f32 %v3270_v20, %v597_v48  ;;  %vm912_vm12 = vcmask 1031168  }
  0x39   : > { %v418_v57 = vand.u32 2147483647, %v3067_v50  ;;  %v419_v58 = vand.u32 2147483647, %v3068_v51  ;;  %v595_v47 = vadd.f32 %v2807_v53, %v581_v52  ;;  %v596_v41 = vadd.f32 %v2808_v56, %v582_v44 }
  0x3a   : > { %v3069_v60 = vround.rtne.f32 %v517_v54  ;;  %v3070_v61 = vround.rtne.f32 %v518_v55  ;;  %v607_v42 = vrot.slane %v599_v59, %v3297_v31  ;;  %v614_v62 = vrot.slane %v599_v59, %v3312_v43 }
  0x3b   : > { %vm420_vm2 = vcmp.gt.f32.partialorder %v418_v57, 1.0  ;;  %vm421_vm3 = vcmp.gt.f32.partialorder %v419_v58, 1.0  ;;  %v3150_v56 = vmov 0   ;;  %vm1031_vm13 = vcmask 883712  }
  0x3c   : > { %v422_v63 = vsel %vm420_vm2, 0.0, %v3067_v50  ;;  %v423_v0 = vsel %vm421_vm3, 0.0, %v3068_v51  ;;  %v521_v1 = vand.u32 2147483647, %v3069_v60  ;;  %v522_v2 = vand.u32 2147483647, %v3070_v61  ;;  %745 = vmatprep.mubr.bf16.mxu0 %v3150_v56  ;;  %3106 = vset.pattern.permute.xlu1 %v3150_v56 }
  0x3d   : > { %v424_v3 = vmul.f32 2.0, %v422_v63  ;;  %v425_v4 = vmul.f32 2.0, %v423_v0  ;;  %v617_v7 = vsub.f32 %v595_v47, %v607_v42  ;;  %v618_v8 = vsub.f32 %v596_v41, %v614_v62  ;;  %3107 = vset.pattern.permute.xlu0 %v3150_v56  ;;  %v3108_v63 = vld [vmem:[%s3671_s2 + $0x8] sm:$0xff]  }
  0x3e   : > { %vm523_vm4 = vcmp.gt.f32.partialorder %v521_v1, 1.0  ;;  %vm524_vm5 = vcmp.gt.f32.partialorder %v522_v2, 1.0  ;;  %vm1150_vm14 = vcmask 875520   ;;  %vm1402_vm15 = vcmask 719872  }
  0x3f   : > { %v426_v20 = vadd.f32 %v424_v3, %v3264_v17  ;;  %v427_v48 = vadd.f32 %v425_v4, %v3266_v18  ;;  %v525_v9 = vsel %vm523_vm4, 0.0, %v3069_v60  ;;  %v526_v14 = vsel %vm524_vm5, 0.0, %v3070_v61  ;;  %v1752_v60 = vld [vmem:[%s3672_s3] sm:$0xff]  ;;  %v1753_v61 = vld [vmem:[%s3672_s3 + $0x8] sm:$0xff] }
  0x40   : > { %v527_v16 = vmul.f32 2.0, %v525_v9  ;;  %v528_v31 = vmul.f32 2.0, %v526_v14  ;;  %v619_v19 = vmul.f32 0.5, %v617_v7  ;;  %v620_v43 = vmul.f32 0.5, %v618_v8  ;;  %v3109_v9 = vld [vmem:[%s3671_s2] sm:$0xff]  }
  0x41   : > { %v436_v21 = vrot.slane %v426_v20, %v3260_v15  ;;  %v443_v22 = vrot.slane %v427_v48, %v3260_v15  ;;  %vm1524_vm1 = vcmask 711680   ;;  %vm1646_vm2 = vcmask 703488  }
  0x42   : > { %v531_v23 = vrot.slane %v527_v16, 7  ;;  %v532_v24 = vrot.slane %v528_v31, 7  ;;  %v3071_v25 = vround.rtne.f32 %v619_v19  ;;  %v3072_v26 = vround.rtne.f32 %v620_v43 }
  0x43   : > { %v444_v27 = vcombine.low %v436_v21, %v443_v22  ;;  %vm1804_vm3 = vcmask 834560   ;;  %vm1826_vm4 = vcmask 130048   ;;  %vm2709_vm5 = vcmask 485376  }
  0x44   : > { %v535_v28 = vadd.f32 %v531_v23, %v3264_v17  ;;  %v536_v29 = vadd.f32 %v532_v24, %v3266_v18  ;;  %v623_v30 = vand.u32 2147483647, %v3071_v25  ;;  %v624_v32 = vand.u32 2147483647, %v3072_v26  ;;  %v3110_v23 = vld [vmem:[%s3671_s2 + $0x10] sm:$0xff]  }
  0x45   : > { %v451_v33 = vrot.slane %v444_v27, %v3260_v15 }
  0x46   : > { %v545_v34 = vrot.slane %v535_v28, %v3260_v15  ;;  %v552_v35 = vrot.slane %v536_v29, %v3260_v15  ;;  %vm625_vm6 = vcmp.gt.f32.partialorder %v623_v30, 1.0  ;;  %vm626_vm7 = vcmp.gt.f32.partialorder %v624_v32, 1.0  ;;  %v3111_v32 = vld [vmem:[%s3671_s2 + $0x18] sm:$0xff]  }
  0x47   : > { %454 = vst.msk [vmem:[#allocation2 + $0x4] ss:$8 sm:$0xf] %vm3239_vm0, %v451_v33  ;;  %v627_v36 = vsel %vm625_vm6, 0.0, %v3071_v25  ;;  %v628_v37 = vsel %vm626_vm7, 0.0, %v3072_v26 }
  0x48   : > { %v553_v38 = vcombine.high %v545_v34, %v552_v35  ;;  %v629_v39 = vmul.f32 2.0, %v627_v36  ;;  %v630_v40 = vmul.f32 2.0, %v628_v37 }
  0x4a   : > { %v560_v45 = vrot.slane %v553_v38, %v3260_v15  ;;  %v633_v46 = vrot.slane %v629_v39, 6  ;;  %v634_v49 = vrot.slane %v630_v40, 6  ;;  %v3112_v40 = vld [vmem:[%s3671_s2 + $0x20] sm:$0xff]  }
  0x4c   : > { %563 = vst.msk [vmem:[#allocation2 + $0x5] ss:$8 sm:$0xf] %vm3239_vm0, %v560_v45  ;;  %v637_v50 = vadd.f32 %v633_v46, %v3264_v17  ;;  %v638_v51 = vadd.f32 %v634_v49, %v3266_v18 }
  0x4e   : > { %v647_v52 = vrot.slane %v637_v50, %v3260_v15  ;;  %v654_v53 = vrot.slane %v638_v51, %v3260_v15 }
  0x50   : > { %v655_v54 = vcombine.low %v647_v52, %v654_v53 }
  0x52   : > { %v662_v55 = vrot.slane %v655_v54, %v3260_v15  ;;  %v3113_v54 = vld [vmem:[%s3671_s2 + $0x28] sm:$0xff]  }
  0x54   : > { %v663_v44 = vcombine.high %v662_v55, %v662_v55 }
  0x56   : > { %666 = vst.msk [vmem:[#allocation2 + $0x6] ss:$8 sm:$0xf] %vm3239_vm0, %v663_v44  ;;  %vm1269_vm0 = vcmask 867328  }
  0x5d   : > { %v673_v17 = vld [vmem:[#allocation2 + $0x10] sm:$0xff]  ;;  %v671_v18 = vld [vmem:[#allocation2] sm:$0xff]  ;;  %v672_v57 = vld [vmem:[#allocation2 + $0x8] sm:$0xff] }
  0x5e   : > { %v676_v58 = vpack.c.bf16 %v673_v17, %v673_v17  ;;  %v3359_v15 = vpack.c.bf16 %v671_v18, %v671_v18  ;;  %v675_v6 = vpack.c.bf16 %v672_v57, %v672_v57  ;;  %v1377_v47 = vld [vmem:[#allocation2 + $0x18] sm:$0xff] }
  0x5f   : > { %v1381_v59 = vpack.c.bf16 %v1377_v47, %v1377_v47 }
  0x60   : > { %694 = vrot.lane.b32.xlu1 %v676_v58, %s3151_s22  ;;  %690 = vrot.lane.b32.xlu0 %v3359_v15, %s3151_s22  ;;  %v812_v0 = vsel %vm703_vm9, %v676_v58, 0  ;;  %v806_v8 = vsel %vm703_vm9, %v3359_v15, 0 }
  0x64   : > { %692 = vrot.lane.b32.xlu0 %v675_v6, %s3151_s22  ;;  %906 = vrot.lane.b32.xlu1 %v3359_v15, %s3152_s23 }
  0x68   : > { %910 = vrot.lane.b32.xlu1 %v676_v58, %s3152_s23  ;;  %908 = vrot.lane.b32.xlu0 %v675_v6, %s3152_s23 }
  0x6c   : > { %1025 = vrot.lane.b32.xlu0 %v3359_v15, %s3153_s26  ;;  %1027 = vrot.lane.b32.xlu1 %v675_v6, %s3153_s26 }
  0x70   : > { %1029 = vrot.lane.b32.xlu0 %v676_v58, %s3153_s26  ;;  %1144 = vrot.lane.b32.xlu1 %v3359_v15, %s3154_s27 }
  0x74   : > { %1146 = vrot.lane.b32.xlu0 %v675_v6, %s3154_s27  ;;  %1148 = vrot.lane.b32.xlu1 %v676_v58, %s3154_s27 }
  0x78   : > { %1263 = vrot.lane.b32.xlu0 %v3359_v15, %s3155_s28  ;;  %1265 = vrot.lane.b32.xlu1 %v675_v6, %s3155_s28 }
  0x7c   : > { %1267 = vrot.lane.b32.xlu0 %v676_v58, %s3155_s28  ;;  %1394 = vrot.lane.b32.xlu1 %v3359_v15, %s3156_s29 }
  0x80   : > { %1396 = vrot.lane.b32.xlu0 %v675_v6, %s3156_s29  ;;  %1398 = vrot.lane.b32.xlu1 %v676_v58, %s3156_s29 }
  0x84   : > { %1400 = vrot.lane.b32.xlu0 %v1381_v59, %s3156_s29  ;;  %1516 = vrot.lane.b32.xlu1 %v3359_v15, %s3157_s30 }
  0x88   : > { %1518 = vrot.lane.b32.xlu0 %v675_v6, %s3157_s30  ;;  %1520 = vrot.lane.b32.xlu1 %v676_v58, %s3157_s30 }
  0x8c   : > { %1522 = vrot.lane.b32.xlu0 %v1381_v59, %s3157_s30  ;;  %1642 = vrot.lane.b32.xlu1 %v676_v58, %s3158_s8 }
  0x90   : > { %1644 = vrot.lane.b32.xlu0 %v1381_v59, %s3158_s8  ;;  %1638 = vrot.lane.b32.xlu1 %v3359_v15, %s3158_s8  ;;  %v3114_v15 = vld [vmem:[%s3671_s2 + $0x30] sm:$0xff]  }
  0x94   : > { %1640 = vrot.lane.b32.xlu0 %v675_v6, %s3158_s8  ;;  %1756 = vperm.xlu1 %3106, %v1752_v60  }
  0x98   : > { %1761 = vperm.xlu0 %3107, %v1753_v61  }
  0xd2   : > { %v695_v41 = vpop.permute.xlu1 %694  ;;  %v691_v42 = vpop.permute.xlu0 %690 }
  0xd3   : > { %v711_v62 = vsel %vm703_vm9, %v695_v41, 0 }
  0xd4   : > { %2927 = vmatpush3.bf16.msra.mxu1 %v711_v62  ;;  %v3115_v62 = vld [vmem:[%s3671_s2 + $0x38] sm:$0xff]  }
  0xd5   : > { %2932 = vmatprep.subr.bf16.mxu1 %v3148_v10 }
  0xd6   : > { %v693_v1 = vpop.permute.xlu0 %692  ;;  %v907_v2 = vpop.permute.xlu1 %906 }
  0xd7   : > { %2929 = vmatmul.mubr.msk.bf16.vlgmr.msra.gmra.mrb[0].mxu1 %vm699_vm10, %v3108_v63  ;;  %v698_v3 = vsel %vm696_vm11, %v693_v1, %v695_v41  ;;  %v697_v4 = vsel %vm696_vm11, %v691_v42, %v693_v1  ;;  %v3116_v1 = vld [vmem:[%s3671_s2 + $0x40] sm:$0xff]  }
  0xd8   : > { %2812 = vmatprep.subr.msk.bf16.mxu0 %vm703_vm9, %v698_v3  ;;  %v705_v7 = vsel %vm703_vm9, %v697_v4, 0  ;;  %2933 = vmatpush3.bf16.msra.mxu1 %v812_v0 }
  0xd9   : > { %714 = vmatpush1.bf16.msra.mxu0 %v705_v7  ;;  %2934 = vmatprep.mubr.msk.bf16.mxu1 %vm3149_vm8, %v3148_v10 }
  0xda   : > { %2816 = vmatprep.subr.msk.bf16.mxu0 %vm703_vm9, %v675_v6  ;;  %v911_v20 = vpop.permute.xlu1 %910  ;;  %v909_v48 = vpop.permute.xlu0 %908  ;;  %2938 = vmatprep.subr.bf16.mxu1 %v3148_v10 }
  0xdb   : > { %v914_v14 = vsel %vm912_vm12, %v909_v48, %v911_v20  ;;  %v925_v16 = vsel %vm703_vm9, %v911_v20, 0  ;;  %v913_v22 = vsel %vm912_vm12, %v907_v2, %v909_v48 }
  0xdc   : > { %2813 = vmatmul.mubr.msk.bf16.vlgmr.msra.gmra.mrb[0].mxu0 %vm699_vm10, %v3108_v63  ;;  %v919_v25 = vsel %vm703_vm9, %v913_v22, 0 }
  0xdd   : > { %815 = vmatpush1.bf16.msra.mxu0 %v806_v8  ;;  %846 = vmatprep.mubr.bf16.mxu0 %v3150_v56 }
  0xde   : > { %v1026_v31 = vpop.permute.xlu0 %1025  ;;  %2822 = vmatprep.subr.msk.bf16.mxu0 %vm703_vm9, %v914_v14  ;;  %v1028_v19 = vpop.permute.xlu1 %1027 }
  0xdf   : > { %2935 = vmatmul.mubr.msk.bf16.vlgmr.msra.gmra.mrb[4].mxu1 %vm699_vm10, %v3109_v9  ;;  %v1032_v36 = vsel %vm1031_vm13, %v1026_v31, %v1028_v19 }
  0xe0   : > { %2939 = vmatpush3.bf16.msra.mxu1 %v925_v16  ;;  %2940 = vmatprep.mubr.msk.bf16.mxu1 %vm3149_vm8, %v3148_v10  ;;  %v1038_v37 = vsel %vm703_vm9, %v1032_v36, 0 }
  0xe1   : > { %2944 = vmatprep.subr.bf16.mxu1 %v3148_v10 }
  0xe2   : > { %v1030_v43 = vpop.permute.xlu0 %1029  ;;  %v1145_v21 = vpop.permute.xlu1 %1144 }
  0xe3   : > { %v1044_v24 = vsel %vm703_vm9, %v1030_v43, 0  ;;  %v1033_v28 = vsel %vm1031_vm13, %v1028_v19, %v1030_v43 }
  0xe6   : > { %v1147_v26 = vpop.permute.xlu0 %1146  ;;  %v1149_v27 = vpop.permute.xlu1 %1148 }
  0xe7   : > { %2941 = vmatmul.mubr.msk.bf16.vlgmr.msra.gmra.mrb[8].mxu1 %vm699_vm10, %v3110_v23  ;;  %v1163_v33 = vsel %vm703_vm9, %v1149_v27, 0  ;;  %v1152_v39 = vsel %vm1150_vm14, %v1147_v26, %v1149_v27  ;;  %v1151_v53 = vsel %vm1150_vm14, %v1145_v21, %v1147_v26 }
  0xe8   : > { %2817 = vmatmul.mubr.msk.bf16.vlgmr.msra.gmra.mrb[0].mxu0 %vm699_vm10, %v3109_v9  ;;  %2945 = vmatpush3.bf16.msra.mxu1 %v1044_v24  ;;  %v1157_v44 = vsel %vm703_vm9, %v1151_v53, 0 }
  0xe9   : > { %928 = vmatpush1.bf16.msra.mxu0 %v919_v25  ;;  %2946 = vmatprep.mubr.msk.bf16.mxu1 %vm3149_vm8, %v3148_v10 }
  0xea   : > { %959 = vmatprep.mubr.bf16.mxu0 %v3150_v56  ;;  %2950 = vmatprep.subr.bf16.mxu1 %v3148_v10  ;;  %v1264_v29 = vpop.permute.xlu0 %1263  ;;  %v1266_v30 = vpop.permute.xlu1 %1265 }
  0xeb   : > { %2828 = vmatprep.subr.msk.bf16.mxu0 %vm703_vm9, %v1033_v28  ;;  %v1270_v47 = vsel %vm1269_vm0, %v1264_v29, %v1266_v30 }
  0xec   : > { %v1276_v61 = vsel %vm703_vm9, %v1270_v47, 0 }
  0xee   : > { %v1268_v34 = vpop.permute.xlu0 %1267  ;;  %v3449_v35 = vpop.permute.xlu1 %1394 }
  0xef   : > { %2947 = vmatmul.mubr.msk.bf16.vlgmr.msra.gmra.mrb[12].mxu1 %vm699_vm10, %v3111_v32  ;;  %v1282_v46 = vsel %vm703_vm9, %v1268_v34, 0  ;;  %v1271_v57 = vsel %vm1269_vm0, %v1266_v30, %v1268_v34 }
  0xf0   : > { %2951 = vmatpush3.bf16.msra.mxu1 %v1163_v33  ;;  %2952 = vmatprep.mubr.msk.bf16.mxu1 %vm3149_vm8, %v3148_v10 }
  0xf1   : > { %2956 = vmatprep.subr.bf16.mxu1 %v3148_v10 }
  0xf2   : > { %v1397_v38 = vpop.permute.xlu0 %1396  ;;  %v1399_v45 = vpop.permute.xlu1 %1398 }
  0xf3   : > { %v1404_v42 = vsel %vm1402_vm15, %v1397_v38, %v1399_v45  ;;  %v1403_v0 = vsel %vm1402_vm15, %v3449_v35, %v1397_v38 }
  0xf4   : > { %2823 = vmatmul.mubr.msk.bf16.vlgmr.msra.gmra.mrb[0].mxu0 %vm699_vm10, %v3110_v23  ;;  %v1410_v2 = vsel %vm703_vm9, %v1403_v0, 0 }
  0xf5   : > { %1047 = vmatpush1.bf16.msra.mxu0 %v1038_v37  ;;  %1078 = vmatprep.mubr.bf16.mxu0 %v3150_v56 }
  0xf6   : > { %2834 = vmatprep.subr.msk.bf16.mxu0 %vm703_vm9, %v1152_v39  ;;  %v1401_v49 = vpop.permute.xlu0 %1400  ;;  %v1517_v50 = vpop.permute.xlu1 %1516 }
  0xf7   : > { %2953 = vmatmul.mubr.msk.bf16.vlgmr.msra.gmra.mrb[16].mxu1 %vm699_vm10, %v3112_v40  ;;  %v1405_v51 = vsel %vm1402_vm15, %v1399_v45, %v1401_v49 }
  0xf8   : > { %2957 = vmatpush3.bf16.msra.mxu1 %v1282_v46  ;;  %2958 = vmatprep.mubr.msk.bf16.mxu1 %vm3149_vm8, %v3148_v10  ;;  %v1416_v55 = vsel %vm703_vm9, %v1405_v51, 0 }
  0xf9   : > { %2962 = vmatprep.subr.bf16.mxu1 %v3148_v10 }
  0xfa   : > { %v1519_v52 = vpop.permute.xlu0 %1518  ;;  %v1521_v17 = vpop.permute.xlu1 %1520 }
  0xfb   : > { %v1526_v3 = vsel %vm1524_vm1, %v1519_v52, %v1521_v17  ;;  %v1525_v4 = vsel %vm1524_vm1, %v1517_v50, %v1519_v52 }
  0xfc   : > { %v1532_v8 = vsel %vm703_vm9, %v1525_v4, 0 }
  0xfe   : > { %v1523_v18 = vpop.permute.xlu0 %1522  ;;  %v1643_v59 = vpop.permute.xlu1 %1642 }
  0xff   : > { %2959 = vmatmul.mubr.msk.bf16.vlgmr.msra.gmra.mrb[20].mxu1 %vm699_vm10, %v3113_v54  ;;  %v1527_v58 = vsel %vm1524_vm1, %v1521_v17, %v1523_v18 }
 0x100   : > { %2829 = vmatmul.mubr.msk.bf16.vlgmr.msra.gmra.mrb[0].mxu0 %vm699_vm10, %v3111_v32  ;;  %2963 = vmatpush3.bf16.msra.mxu1 %v1416_v55  ;;  %v1538_v6 = vsel %vm703_vm9, %v1527_v58, 0 }
 0x101   : > { %1166 = vmatpush1.bf16.msra.mxu0 %v1157_v44  ;;  %2964 = vmatprep.mubr.msk.bf16.mxu1 %vm3149_vm8, %v3148_v10 }
 0x102   : > { %1197 = vmatprep.mubr.bf16.mxu0 %v3150_v56  ;;  %2968 = vmatprep.subr.bf16.mxu1 %v3148_v10  ;;  %v1645_v60 = vpop.permute.xlu0 %1644  ;;  %v1639_v48 = vpop.permute.xlu1 %1638 }
 0x103   : > { %2840 = vmatprep.subr.msk.bf16.mxu0 %vm703_vm9, %v1271_v57  ;;  %v1649_v41 = vsel %vm1646_vm2, %v1643_v59, %v1645_v60 }
 0x104   : > { %v1660_v63 = vsel %vm703_vm9, %v1649_v41, 0 }
 0x106   : > { %v1641_v7 = vpop.permute.xlu0 %1640 }
 0x107   : > { %2965 = vmatmul.mubr.msk.bf16.vlgmr.msra.gmra.mrb[24].mxu1 %vm699_vm10, %v3114_v15  ;;  %v1648_v20 = vsel %vm1646_vm2, %v1641_v7, %v1643_v59  ;;  %v1647_v9 = vsel %vm1646_vm2, %v1639_v48, %v1641_v7 }
 0x108   : > { %2969 = vmatpush3.bf16.msra.mxu1 %v1538_v6  ;;  %2970 = vmatprep.mubr.msk.bf16.mxu1 %vm3149_vm8, %v3148_v10  ;;  %v1654_v14 = vsel %vm703_vm9, %v1647_v9, 0 }
 0x109   : > { %2974 = vmatprep.subr.bf16.mxu1 %v3148_v10 }
 0x10c   : > { %2835 = vmatmul.mubr.msk.bf16.vlgmr.msra.gmra.mrb[0].mxu0 %vm699_vm10, %v3112_v40 }
 0x10d   : > { %1285 = vmatpush1.bf16.msra.mxu0 %v1276_v61  ;;  %1316 = vmatprep.mubr.bf16.mxu0 %v3150_v56 }
 0x10e   : > { %2846 = vmatprep.subr.msk.bf16.mxu0 %vm703_vm9, %v1404_v42 }
 0x10f   : > { %2971 = vmatmul.mubr.msk.bf16.vlgmr.msra.gmra.mrb[28].mxu1 %vm699_vm10, %v3115_v62 }
 0x110   : > { %2975 = vmatpush3.bf16.msra.mxu1 %v1660_v63  ;;  %2976 = vmatprep.mubr.msk.bf16.mxu1 %vm3149_vm8, %v3148_v10 }
 0x111   : > { %2980 = vmatprep.subr.bf16.mxu1 %v3148_v10 }
 0x113   : > { %v1757_v0 = vpop.permute.xlu1 %1756 }
 0x117   : > { %2977 = vmatmul.mubr.msk.bf16.vlgmr.msra.gmra.mrb[32].mxu1 %vm699_vm10, %v3116_v1  ;;  %v1762_v7 = vpop.permute.xlu0 %1761 }
 0x118   : > { %2841 = vmatmul.mubr.msk.bf16.vlgmr.msra.gmra.mrb[0].mxu0 %vm699_vm10, %v3113_v54  ;;  %2982 = vmatprep.mubr.msk.bf16.mxu1 %vm3149_vm8, %v3148_v10 }
 0x119   : > { %1419 = vmatpush1.bf16.msra.mxu0 %v1410_v2  ;;  %1450 = vmatprep.mubr.bf16.mxu0 %v3150_v56 }
 0x11a   : > { %2852 = vmatprep.subr.msk.bf16.mxu0 %vm703_vm9, %v1526_v3  ;;  %v1776_v3 = vld [vmem:[%s3675_s6] sm:$0x7] }
 0x11b   : > { %v1789_v9 = vrot.slane %v1776_v3, %v309_v13 }
 0x124   : > { %2847 = vmatmul.mubr.msk.bf16.vlgmr.msra.gmra.mrb[0].mxu0 %vm699_vm10, %v3114_v15 }
 0x125   : > { %1541 = vmatpush1.bf16.msra.mxu0 %v1532_v8  ;;  %1572 = vmatprep.mubr.bf16.mxu0 %v3150_v56 }
 0x126   : > { %2858 = vmatprep.subr.msk.bf16.mxu0 %vm703_vm9, %v1648_v20 }
 0x130   : > { %2853 = vmatmul.mubr.msk.bf16.vlgmr.msra.gmra.mrb[0].mxu0 %vm699_vm10, %v3115_v62 }
 0x131   : > { %1663 = vmatpush1.bf16.msra.mxu0 %v1654_v14  ;;  %1694 = vmatprep.mubr.bf16.mxu0 %v3150_v56 }
 0x13c   : > { %2859 = vmatmul.mubr.msk.bf16.vlgmr.msra.gmra.mrb[0].mxu0 %vm699_vm10, %v3116_v1 }
 0x13d   : > { %1862 = vmatprep.mubr.bf16.mxu0 %v3150_v56 }
 0x1aa   : > { %v790_v16 = vpop.f32.mrb[0].mxu1 }
 0x1ab   : > { %v2930_v31 = vpop.f32.mrb[1].mxu1 }
 0x1ac   : > { %v793_v19 = vpop.f32.mrb[2].mxu1 }
 0x1ad   : > { %v2931_v43 = vpop.f32.mrb[3].mxu1 }
 0x1b2   : > { %v891_v21 = vpop.f32.mrb[4].mxu1 }
 0x1b3   : > { %v892_v22 = vadd.f32 %v891_v21, %v790_v16  ;;  %v2936_v23 = vpop.f32.mrb[5].mxu1 }
 0x1b4   : > { %v894_v24 = vpop.f32.mrb[6].mxu1 }
 0x1b5   : > { %v895_v25 = vadd.f32 %v894_v24, %v793_v19  ;;  %v2937_v26 = vpop.f32.mrb[7].mxu1 }
 0x1ba   : > { %v1004_v27 = vpop.f32.mrb[8].mxu1 }
 0x1bb   : > { %v1013_v28 = vadd.f32 %v1004_v27, %v892_v22  ;;  %v2942_v29 = vpop.f32.mrb[9].mxu1 }
 0x1bc   : > { %v1007_v30 = vpop.f32.mrb[10].mxu1 }
 0x1bd   : > { %v1016_v32 = vadd.f32 %v1007_v30, %v895_v25  ;;  %v2943_v33 = vpop.f32.mrb[11].mxu1 }
 0x1c2   : > { %v1123_v34 = vpop.f32.mrb[12].mxu1 }
 0x1c3   : > { %v1132_v35 = vadd.f32 %v1123_v34, %v1013_v28  ;;  %v2948_v36 = vpop.f32.mrb[13].mxu1  ;;  %v1781_v28 = vrot.slane %v1776_v3, %v301_v11 }
 0x1c4   : > { %v1126_v37 = vpop.f32.mrb[14].mxu1 }
 0x1c5   : > { %v1135_v38 = vadd.f32 %v1126_v37, %v1016_v32  ;;  %v2949_v39 = vpop.f32.mrb[15].mxu1  ;;  %v1785_v32 = vrot.slane %v1776_v3, %v305_v12 }
 0x1ca   : > { %v1242_v40 = vpop.f32.mrb[16].mxu1 }
 0x1cb   : > { %v1251_v45 = vadd.f32 %v1242_v40, %v1132_v35  ;;  %v2954_v46 = vpop.f32.mrb[17].mxu1 }
 0x1cc   : > { %v1245_v49 = vpop.f32.mrb[18].mxu1 }
 0x1cd   : > { %v1254_v50 = vadd.f32 %v1245_v49, %v1135_v38  ;;  %v2955_v51 = vpop.f32.mrb[19].mxu1 }
 0x1d2   : > { %v1361_v52 = vpop.f32.mrb[20].mxu1 }
 0x1d3   : > { %v1370_v53 = vadd.f32 %v1361_v52, %v1251_v45  ;;  %v2960_v54 = vpop.f32.mrb[21].mxu1  ;;  %v2861_v52 = vld [vmem:[%s3673_s4 + $0x2] sm:$0x3] }
 0x1d4   : > { %v1364_v55 = vpop.f32.mrb[22].mxu1 }
 0x1d5   : > { %v1373_v44 = vadd.f32 %v1364_v55, %v1254_v50  ;;  %v2961_v17 = vpop.f32.mrb[23].mxu1 }
 0x1da   : > { %v1495_v18 = vpop.f32.mrb[24].mxu1 }
 0x1db   : > { %v1504_v57 = vadd.f32 %v1495_v18, %v1370_v53  ;;  %v2966_v58 = vpop.f32.mrb[25].mxu1  ;;  %v1809_v18 = vld [vmem:[%s3673_s4] sm:$0x3] }
 0x1dc   : > { %v1498_v15 = vpop.f32.mrb[26].mxu1 }
 0x1dd   : > { %v1507_v6 = vadd.f32 %v1498_v15, %v1373_v44  ;;  %v2967_v47 = vpop.f32.mrb[27].mxu1 }
 0x1e2   : > { %v1617_v59 = vpop.f32.mrb[28].mxu1 }
 0x1e3   : > { %v1626_v60 = vadd.f32 %v1617_v59, %v1504_v57  ;;  %v2972_v61 = vpop.f32.mrb[29].mxu1  ;;  %v2866_v59 = vld [vmem:[%s3673_s4 + $0x4] sm:$0x3] }
 0x1e4   : > { %v1620_v41 = vpop.f32.mrb[30].mxu1 }
 0x1e5   : > { %v1629_v42 = vadd.f32 %v1620_v41, %v1507_v6  ;;  %v2973_v62 = vpop.f32.mrb[31].mxu1 }
 0x1ea   : > { %v1739_v63 = vpop.f32.mrb[32].mxu1 }
 0x1eb   : > { %v1748_v1 = vadd.f32 %v1739_v63, %v1626_v60  ;;  %v2978_v2 = vpop.f32.mrb[33].mxu1  ;;  %v2869_v63 = vld [vmem:[%s3673_s4 + $0x6] sm:$0x3] }
 0x1ec   : > { %v1742_v4 = vpop.f32.mrb[34].mxu1 }
 0x1ed   : > { %v1766_v8 = vadd.f32 %v1757_v0, %v1748_v1  ;;  %v1751_v20 = vadd.f32 %v1742_v4, %v1629_v42  ;;  %v2979_v48 = vpop.f32.mrb[35].mxu1 }
 0x1ef   : > { %v1772_v14 = vmax.f32 %v1766_v8, 0.0  ;;  %v1769_v16 = vadd.f32 %v1762_v7, %v1751_v20 }
 0x1f1   : > { %v1775_v31 = vmax.f32 %v1769_v16, 0.0  ;;  %v1795_v19 = vmul.f32 %v1789_v9, %v1772_v14  ;;  %v2875_v14 = vld [vmem:[%s3673_s4 + $0xa] sm:$0x3] }
 0x1f3   : > { %v1798_v43 = vmul.f32 %v1789_v9, %v1775_v31 }
 0x1f5   : > { %v1801_v21 = vpack.c.bf16 %v1798_v43, %v1795_v19 }
 0x1f7   : > { %1805 = vst.msk [vmem:[#allocation3 + $0x10] sm:$0xff] %vm1804_vm3, %v1801_v21 }
 0x1fe   : > { %v1808_v11 = vld [vmem:[#allocation3 + $0x10] sm:$0xff] }
 0x20f   : > { %v1696_v22 = vpop.f32.mrb[0].mxu0 }
 0x210   : > { %v1764_v23 = vadd.f32 %v1757_v0, %v1696_v22  ;;  %v1698_v24 = vpop.f32.mrb[1].mxu0  ;;  %v2878_v22 = vld [vmem:[%s3673_s4 + $0xc] sm:$0x3] }
 0x211   : > { %v1765_v25 = vadd.f32 %v1757_v0, %v1698_v24  ;;  %v1700_v26 = vpop.f32.mrb[2].mxu0 }
 0x212   : > { %v1770_v27 = vmax.f32 %v1764_v23, 0.0  ;;  %v1767_v29 = vadd.f32 %v1762_v7, %v1700_v26  ;;  %v1702_v30 = vpop.f32.mrb[3].mxu0 }
 0x213   : > { %v1771_v13 = vmax.f32 %v1765_v25, 0.0  ;;  %v1768_v33 = vadd.f32 %v1762_v7, %v1702_v30  ;;  %v2872_v7 = vld [vmem:[%s3673_s4 + $0x8] sm:$0x3]  ;;  %v2884_v30 = vld [vmem:[%s3673_s4 + $0x10] sm:$0x3] }
 0x214   : > { %v1773_v34 = vmax.f32 %v1767_v29, 0.0  ;;  %v1793_v36 = vmul.f32 %v1781_v28, %v1770_v27  ;;  %v2881_v27 = vld [vmem:[%s3673_s4 + $0xe] sm:$0x3] }
 0x215   : > { %v1774_v35 = vmax.f32 %v1768_v33, 0.0  ;;  %v1794_v38 = vmul.f32 %v1785_v32, %v1771_v13 }
 0x216   : > { %v1796_v37 = vmul.f32 %v1781_v28, %v1773_v34 }
 0x217   : > { %v1797_v39 = vmul.f32 %v1785_v32, %v1774_v35 }
 0x218   : > { %v1799_v40 = vpack.c.bf16 %v1796_v37, %v1793_v36 }
 0x219   : > { %v1800_v45 = vpack.c.bf16 %v1797_v39, %v1794_v38 }
 0x21a   : > { %1815 = vrot.lane.b32.xlu0 %v1799_v40, %s3151_s22 }
 0x21b   : > { %1817 = vrot.lane.b32.xlu1 %v1800_v45, %s3151_s22 }
 0x21e   : > { %2001 = vrot.lane.b32.xlu0 %v1808_v11, %s3152_s23 }
 0x21f   : > { %1819 = vrot.lane.b32.xlu1 %v1808_v11, %s3151_s22 }
 0x222   : > { %2099 = vrot.lane.b32.xlu0 %v1800_v45, %s3153_s26 }
 0x223   : > { %1999 = vrot.lane.b32.xlu1 %v1800_v45, %s3152_s23 }
 0x226   : > { %2097 = vrot.lane.b32.xlu0 %v1799_v40, %s3153_s26 }
 0x227   : > { %1997 = vrot.lane.b32.xlu1 %v1799_v40, %s3152_s23 }
 0x22a   : > { %2201 = vrot.lane.b32.xlu0 %v1808_v11, %s3154_s27 }
 0x22b   : > { %2101 = vrot.lane.b32.xlu1 %v1808_v11, %s3153_s26  ;;  %s292_s26 = scalar_lea.vmem %s3676_s7, %s3066_s19 }
 0x22e   : > { %2299 = vrot.lane.b32.xlu0 %v1800_v45, %s3155_s28 }
 0x22f   : > { %2199 = vrot.lane.b32.xlu1 %v1800_v45, %s3154_s27 }
 0x232   : > { %2297 = vrot.lane.b32.xlu0 %v1799_v40, %s3155_s28 }
 0x233   : > { %2197 = vrot.lane.b32.xlu1 %v1799_v40, %s3154_s27 }
 0x236   : > { %2401 = vrot.lane.b32.xlu0 %v1808_v11, %s3156_s29 }
 0x237   : > { %2301 = vrot.lane.b32.xlu1 %v1808_v11, %s3155_s28 }
 0x23a   : > { %2499 = vrot.lane.b32.xlu0 %v1800_v45, %s3157_s30 }
 0x23b   : > { %2399 = vrot.lane.b32.xlu1 %v1800_v45, %s3156_s29 }
 0x23e   : > { %2497 = vrot.lane.b32.xlu0 %v1799_v40, %s3157_s30 }
 0x23f   : > { %2397 = vrot.lane.b32.xlu1 %v1799_v40, %s3156_s29 }
 0x242   : > { %2601 = vrot.lane.b32.xlu0 %v1808_v11, %s3158_s8 }
 0x243   : > { %2501 = vrot.lane.b32.xlu1 %v1808_v11, %s3157_s30 }
 0x246   : > { %2698 = vperm.xlu0 %3107, %v2695_v5  }
 0x247   : > { %2599 = vrot.lane.b32.xlu1 %v1800_v45, %s3158_s8 }
 0x24b   : > { %2597 = vrot.lane.b32.xlu1 %v1799_v40, %s3158_s8 }
 0x28c   : > { %v1816_v12 = vpop.permute.xlu0 %1815 }
 0x28d   : > { %v1818_v46 = vpop.permute.xlu1 %1817 }
 0x28e   : > { %v1821_v53 = vsel %vm696_vm11, %v1816_v12, %v1818_v46 }
 0x290   : > { %v2002_v49 = vpop.permute.xlu0 %2001 }
 0x291   : > { %v1820_v50 = vpop.permute.xlu1 %1819 }
 0x292   : > { %2981 = vmatpush3.bf16.msra.mxu1 %v1820_v50  ;;  %v1822_v51 = vsel %vm696_vm11, %v1818_v46, %v1820_v50 }
 0x293   : > { %1830 = vmatprep.subr.bf16.mxu0 %v1822_v51  ;;  %2986 = vmatprep.subr.bf16.mxu1 %v3148_v10 }
 0x294   : > { %1831 = vmatpush1.bf16.msra.mxu0 %v1821_v53  ;;  %v2100_v55 = vpop.permute.xlu0 %2099 }
 0x295   : > { %2983 = vmatmul.mubr.msk.bf16.vlgmr.msra.gmra.mrb[36].mxu1 %vm1826_vm4, %v2861_v52  ;;  %1914 = vmatprep.subr.bf16.mxu0 %v1800_v45  ;;  %v2000_v54 = vpop.permute.xlu1 %1999 }
 0x296   : > { %2987 = vmatpush3.bf16.msra.mxu1 %v1808_v11  ;;  %2988 = vmatprep.mubr.msk.bf16.mxu1 %vm3149_vm8, %v3148_v10  ;;  %v2004_v44 = vsel %vm912_vm12, %v2000_v54, %v2002_v49 }
 0x297   : > { %2862 = vmatmul.mubr.msk.bf16.vlgmr.msra.gmra.mrb[4].mxu0 %vm1826_vm4, %v2861_v52  ;;  %2992 = vmatprep.subr.bf16.mxu1 %v3148_v10 }
 0x298   : > { %1915 = vmatpush1.bf16.msra.mxu0 %v1799_v40  ;;  %1946 = vmatprep.mubr.bf16.mxu0 %v3150_v56  ;;  %v2098_v57 = vpop.permute.xlu0 %2097 }
 0x299   : > { %2011 = vmatprep.subr.bf16.mxu0 %v2004_v44  ;;  %v1998_v17 = vpop.permute.xlu1 %1997  ;;  %v2103_v41 = vsel %vm1031_vm13, %v2098_v57, %v2100_v55 }
 0x29a   : > { %v2003_v6 = vsel %vm912_vm12, %v1998_v17, %v2000_v54 }
 0x29c   : > { %v2202_v60 = vpop.permute.xlu0 %2201 }
 0x29d   : > { %2989 = vmatmul.mubr.msk.bf16.vlgmr.msra.gmra.mrb[40].mxu1 %vm1826_vm4, %v1809_v18  ;;  %v2102_v58 = vpop.permute.xlu1 %2101 }
 0x29e   : > { %2993 = vmatpush3.bf16.msra.mxu1 %v2002_v49  ;;  %v2104_v15 = vsel %vm1031_vm13, %v2100_v55, %v2102_v58  ;;  %2994 = vmatprep.mubr.msk.bf16.mxu1 %vm3149_vm8, %v3148_v10 }
 0x29f   : > { %2864 = vmatmul.mubr.msk.bf16.vlgmr.msra.gmra.mrb[8].mxu0 %vm1826_vm4, %v1809_v18  ;;  %2998 = vmatprep.subr.bf16.mxu1 %v3148_v10 }
 0x2a0   : > { %2012 = vmatpush1.bf16.msra.mxu0 %v2003_v6  ;;  %2043 = vmatprep.mubr.bf16.mxu0 %v3150_v56  ;;  %v2300_v62 = vpop.permute.xlu0 %2299 }
 0x2a1   : > { %2111 = vmatprep.subr.bf16.mxu0 %v2104_v15  ;;  %v2200_v47 = vpop.permute.xlu1 %2199 }
 0x2a2   : > { %v2204_v42 = vsel %vm1150_vm14, %v2200_v47, %v2202_v60 }
 0x2a4   : > { %v2298_v1 = vpop.permute.xlu0 %2297 }
 0x2a5   : > { %2995 = vmatmul.mubr.msk.bf16.vlgmr.msra.gmra.mrb[44].mxu1 %vm1826_vm4, %v2866_v59  ;;  %v2198_v61 = vpop.permute.xlu1 %2197  ;;  %v2303_v20 = vsel %vm1269_vm0, %v2298_v1, %v2300_v62 }
 0x2a6   : > { %2999 = vmatpush3.bf16.msra.mxu1 %v2102_v58  ;;  %3000 = vmatprep.mubr.msk.bf16.mxu1 %vm3149_vm8, %v3148_v10  ;;  %v2203_v2 = vsel %vm1150_vm14, %v2198_v61, %v2200_v47 }
 0x2a7   : > { %2867 = vmatmul.mubr.msk.bf16.vlgmr.msra.gmra.mrb[12].mxu0 %vm1826_vm4, %v2866_v59  ;;  %3004 = vmatprep.subr.bf16.mxu1 %v3148_v10 }
 0x2a8   : > { %2112 = vmatpush1.bf16.msra.mxu0 %v2103_v41  ;;  %2143 = vmatprep.mubr.bf16.mxu0 %v3150_v56  ;;  %v2402_v8 = vpop.permute.xlu0 %2401 }
 0x2a9   : > { %2211 = vmatprep.subr.bf16.mxu0 %v2204_v42  ;;  %v2302_v0 = vpop.permute.xlu1 %2301 }
 0x2aa   : > { %v2304_v3 = vsel %vm1269_vm0, %v2300_v62, %v2302_v0 }
 0x2ac   : > { %v2500_v16 = vpop.permute.xlu0 %2499 }
 0x2ad   : > { %3001 = vmatmul.mubr.msk.bf16.vlgmr.msra.gmra.mrb[48].mxu1 %vm1826_vm4, %v2869_v63  ;;  %v2400_v4 = vpop.permute.xlu1 %2399 }
 0x2ae   : > { %3005 = vmatpush3.bf16.msra.mxu1 %v2202_v60  ;;  %3006 = vmatprep.mubr.msk.bf16.mxu1 %vm3149_vm8, %v3148_v10  ;;  %v2404_v9 = vsel %vm1402_vm15, %v2400_v4, %v2402_v8 }
 0x2af   : > { %2870 = vmatmul.mubr.msk.bf16.vlgmr.msra.gmra.mrb[16].mxu0 %vm1826_vm4, %v2869_v63  ;;  %3010 = vmatprep.subr.bf16.mxu1 %v3148_v10 }
 0x2b0   : > { %2212 = vmatpush1.bf16.msra.mxu0 %v2203_v2  ;;  %2243 = vmatprep.mubr.bf16.mxu0 %v3150_v56  ;;  %v2498_v21 = vpop.permute.xlu0 %2497 }
 0x2b1   : > { %2311 = vmatprep.subr.bf16.mxu0 %v2304_v3  ;;  %v2398_v48 = vpop.permute.xlu1 %2397  ;;  %v2503_v24 = vsel %vm1524_vm1, %v2498_v21, %v2500_v16 }
 0x2b2   : > { %v2403_v19 = vsel %vm1402_vm15, %v2398_v48, %v2400_v4 }
 0x2b4   : > { %v2602_v25 = vpop.permute.xlu0 %2601 }
 0x2b5   : > { %3007 = vmatmul.mubr.msk.bf16.vlgmr.msra.gmra.mrb[52].mxu1 %vm1826_vm4, %v2872_v7  ;;  %v2502_v31 = vpop.permute.xlu1 %2501 }
 0x2b6   : > { %3011 = vmatpush3.bf16.msra.mxu1 %v2302_v0  ;;  %3012 = vmatprep.mubr.msk.bf16.mxu1 %vm3149_vm8, %v3148_v10  ;;  %v2504_v43 = vsel %vm1524_vm1, %v2500_v16, %v2502_v31 }
 0x2b7   : > { %2873 = vmatmul.mubr.msk.bf16.vlgmr.msra.gmra.mrb[20].mxu0 %vm1826_vm4, %v2872_v7  ;;  %3016 = vmatprep.subr.bf16.mxu1 %v3148_v10 }
 0x2b8   : > { %2312 = vmatpush1.bf16.msra.mxu0 %v2303_v20  ;;  %2343 = vmatprep.mubr.bf16.mxu0 %v3150_v56 }
 0x2b9   : > { %2411 = vmatprep.subr.bf16.mxu0 %v2404_v9  ;;  %v2600_v23 = vpop.permute.xlu1 %2599 }
 0x2ba   : > { %v2604_v26 = vsel %vm1646_vm2, %v2600_v23, %v2602_v25 }
 0x2bd   : > { %3013 = vmatmul.mubr.msk.bf16.vlgmr.msra.gmra.mrb[56].mxu1 %vm1826_vm4, %v2875_v14  ;;  %v2598_v28 = vpop.permute.xlu1 %2597 }
 0x2be   : > { %3017 = vmatpush3.bf16.msra.mxu1 %v2402_v8  ;;  %3018 = vmatprep.mubr.msk.bf16.mxu1 %vm3149_vm8, %v3148_v10  ;;  %v2603_v29 = vsel %vm1646_vm2, %v2598_v28, %v2600_v23 }
 0x2bf   : > { %2876 = vmatmul.mubr.msk.bf16.vlgmr.msra.gmra.mrb[24].mxu0 %vm1826_vm4, %v2875_v14  ;;  %3022 = vmatprep.subr.bf16.mxu1 %v3148_v10 }
 0x2c0   : > { %2412 = vmatpush1.bf16.msra.mxu0 %v2403_v19  ;;  %2443 = vmatprep.mubr.bf16.mxu0 %v3150_v56 }
 0x2c1   : > { %2511 = vmatprep.subr.bf16.mxu0 %v2504_v43 }
 0x2c5   : > { %3019 = vmatmul.mubr.msk.bf16.vlgmr.msra.gmra.mrb[60].mxu1 %vm1826_vm4, %v2878_v22 }
 0x2c6   : > { %3023 = vmatpush3.bf16.msra.mxu1 %v2502_v31  ;;  %3024 = vmatprep.mubr.msk.bf16.mxu1 %vm3149_vm8, %v3148_v10 }
 0x2c7   : > { %2879 = vmatmul.mubr.msk.bf16.vlgmr.msra.gmra.mrb[28].mxu0 %vm1826_vm4, %v2878_v22  ;;  %3028 = vmatprep.subr.bf16.mxu1 %v3148_v10 }
 0x2c8   : > { %2512 = vmatpush1.bf16.msra.mxu0 %v2503_v24  ;;  %2543 = vmatprep.mubr.bf16.mxu0 %v3150_v56 }
 0x2c9   : > { %2611 = vmatprep.subr.bf16.mxu0 %v2604_v26 }
 0x2cd   : > { %3025 = vmatmul.mubr.msk.bf16.vlgmr.msra.gmra.mrb[64].mxu1 %vm1826_vm4, %v2881_v27 }
 0x2ce   : > { %3029 = vmatpush3.bf16.msra.mxu1 %v2602_v25  ;;  %3030 = vmatprep.mubr.msk.bf16.mxu1 %vm3149_vm8, %v3148_v10 }
 0x2cf   : > { %2882 = vmatmul.mubr.msk.bf16.vlgmr.msra.gmra.mrb[32].mxu0 %vm1826_vm4, %v2881_v27 }
 0x2d0   : > { %2612 = vmatpush1.bf16.msra.mxu0 %v2603_v29  ;;  %2643 = vmatprep.mubr.bf16.mxu0 %v3150_v56 }
 0x2d5   : > { %3031 = vmatmul.mubr.msk.bf16.vlgmr.msra.gmra.mrb[68].mxu1 %vm1826_vm4, %v2884_v30 }
 0x2d7   : > { %2885 = vmatmul.mubr.msk.bf16.vlgmr.msra.gmra.mrb[36].mxu0 %vm1826_vm4, %v2884_v30 }
 0x368   : > { %v1905_v13 = vpop.f32.mrb[36].mxu1 }
 0x369   : > { %v2984_v32 = vpop.f32.mrb[37].mxu1 }
 0x36a   : > { %v1864_v33 = vpop.f32.mrb[4].mxu0  ;;  %v1908_v34 = vpop.f32.mrb[38].mxu1 }
 0x36b   : > { %v1866_v10 = vpop.f32.mrb[5].mxu0  ;;  %v2985_v35 = vpop.f32.mrb[39].mxu1 }
 0x36c   : > { %v1868_v36 = vpop.f32.mrb[6].mxu0 }
 0x36d   : > { %v1869_v37 = vpop.f32.mrb[7].mxu0 }
 0x370   : > { %v1989_v38 = vpop.f32.mrb[40].mxu1 }
 0x371   : > { %v1990_v39 = vadd.f32 %v1989_v38, %v1905_v13  ;;  %v2990_v40 = vpop.f32.mrb[41].mxu1 }
 0x372   : > { %v1948_v56 = vpop.f32.mrb[8].mxu0  ;;  %v1992_v45 = vpop.f32.mrb[42].mxu1 }
 0x373   : > { %v1949_v11 = vadd.f32 %v1948_v56, %v1864_v33  ;;  %v1950_v5 = vpop.f32.mrb[9].mxu0  ;;  %v2991_v12 = vpop.f32.mrb[43].mxu1 }
 0x374   : > { %v1951_v46 = vadd.f32 %v1950_v5, %v1866_v10  ;;  %v1952_v49 = vpop.f32.mrb[10].mxu0 }
 0x375   : > { %v1953_v50 = vpop.f32.mrb[11].mxu0 }
 0x378   : > { %v2086_v51 = vpop.f32.mrb[44].mxu1 }
 0x379   : > { %v2094_v52 = vadd.f32 %v2086_v51, %v1990_v39  ;;  %v2996_v53 = vpop.f32.mrb[45].mxu1 }
 0x37a   : > { %v2045_v54 = vpop.f32.mrb[12].mxu0  ;;  %v2089_v55 = vpop.f32.mrb[46].mxu1 }
 0x37b   : > { %v2092_v44 = vadd.f32 %v2045_v54, %v1949_v11  ;;  %v2047_v17 = vpop.f32.mrb[13].mxu0  ;;  %v2997_v18 = vpop.f32.mrb[47].mxu1 }
 0x37c   : > { %v2093_v57 = vadd.f32 %v2047_v17, %v1951_v46  ;;  %v2049_v58 = vpop.f32.mrb[14].mxu0  ;;  %v2699_v54 = vpop.permute.xlu0 %2698 }
 0x37d   : > { %v2050_v15 = vpop.f32.mrb[15].mxu0 }
 0x380   : > { %v2186_v6 = vpop.f32.mrb[48].mxu1 }
 0x381   : > { %v2194_v47 = vadd.f32 %v2186_v6, %v2094_v52  ;;  %v3002_v59 = vpop.f32.mrb[49].mxu1 }
 0x382   : > { %v2145_v60 = vpop.f32.mrb[16].mxu0  ;;  %v2189_v61 = vpop.f32.mrb[50].mxu1 }
 0x383   : > { %v2192_v41 = vadd.f32 %v2145_v60, %v2092_v44  ;;  %v2147_v42 = vpop.f32.mrb[17].mxu0  ;;  %v3003_v62 = vpop.f32.mrb[51].mxu1 }
 0x384   : > { %v2193_v63 = vadd.f32 %v2147_v42, %v2093_v57  ;;  %v2149_v0 = vpop.f32.mrb[18].mxu0 }
 0x385   : > { %v2150_v1 = vpop.f32.mrb[19].mxu0 }
 0x388   : > { %v2286_v2 = vpop.f32.mrb[52].mxu1 }
 0x389   : > { %v2294_v3 = vadd.f32 %v2286_v2, %v2194_v47  ;;  %v3008_v4 = vpop.f32.mrb[53].mxu1 }
 0x38a   : > { %v2245_v7 = vpop.f32.mrb[20].mxu0  ;;  %v2289_v8 = vpop.f32.mrb[54].mxu1 }
 0x38b   : > { %v2292_v20 = vadd.f32 %v2245_v7, %v2192_v41  ;;  %v2247_v48 = vpop.f32.mrb[21].mxu0  ;;  %v3009_v9 = vpop.f32.mrb[55].mxu1 }
 0x38c   : > { %v2293_v14 = vadd.f32 %v2247_v48, %v2193_v63  ;;  %v2249_v16 = vpop.f32.mrb[22].mxu0 }
 0x38d   : > { %v2250_v31 = vpop.f32.mrb[23].mxu0 }
 0x390   : > { %v2386_v19 = vpop.f32.mrb[56].mxu1 }
 0x391   : > { %v2394_v43 = vadd.f32 %v2386_v19, %v2294_v3  ;;  %v3014_v21 = vpop.f32.mrb[57].mxu1 }
 0x392   : > { %v2345_v22 = vpop.f32.mrb[24].mxu0  ;;  %v2389_v23 = vpop.f32.mrb[58].mxu1 }
 0x393   : > { %v2392_v24 = vadd.f32 %v2345_v22, %v2292_v20  ;;  %v2347_v25 = vpop.f32.mrb[25].mxu0  ;;  %v3015_v26 = vpop.f32.mrb[59].mxu1 }
 0x394   : > { %v2393_v27 = vadd.f32 %v2347_v25, %v2293_v14  ;;  %v2349_v28 = vpop.f32.mrb[26].mxu0 }
 0x395   : > { %v2350_v29 = vpop.f32.mrb[27].mxu0 }
 0x398   : > { %v2486_v30 = vpop.f32.mrb[60].mxu1 }
 0x399   : > { %v2494_v13 = vadd.f32 %v2486_v30, %v2394_v43  ;;  %v3020_v32 = vpop.f32.mrb[61].mxu1 }
 0x39a   : > { %v2445_v33 = vpop.f32.mrb[28].mxu0  ;;  %v2489_v34 = vpop.f32.mrb[62].mxu1 }
 0x39b   : > { %v2492_v10 = vadd.f32 %v2445_v33, %v2392_v24  ;;  %v2447_v35 = vpop.f32.mrb[29].mxu0  ;;  %v3021_v36 = vpop.f32.mrb[63].mxu1 }
 0x39c   : > { %v2493_v37 = vadd.f32 %v2447_v35, %v2393_v27  ;;  %v2449_v38 = vpop.f32.mrb[30].mxu0 }
 0x39d   : > { %v2450_v39 = vpop.f32.mrb[31].mxu0 }
 0x3a0   : > { %v2586_v40 = vpop.f32.mrb[64].mxu1 }
 0x3a1   : > { %v2594_v56 = vadd.f32 %v2586_v40, %v2494_v13  ;;  %v3026_v45 = vpop.f32.mrb[65].mxu1 }
 0x3a2   : > { %v2545_v11 = vpop.f32.mrb[32].mxu0  ;;  %v2589_v5 = vpop.f32.mrb[66].mxu1 }
 0x3a3   : > { %v2592_v12 = vadd.f32 %v2545_v11, %v2492_v10  ;;  %v2547_v46 = vpop.f32.mrb[33].mxu0  ;;  %v3027_v49 = vpop.f32.mrb[67].mxu1 }
 0x3a4   : > { %v2593_v50 = vadd.f32 %v2547_v46, %v2493_v37  ;;  %v2549_v51 = vpop.f32.mrb[34].mxu0 }
 0x3a5   : > { %v2550_v52 = vpop.f32.mrb[35].mxu0 }
 0x3a8   : > { %v2686_v53 = vpop.f32.mrb[68].mxu1 }
 0x3a9   : > { %v2694_v55 = vadd.f32 %v2686_v53, %v2594_v56  ;;  %v3032_v44 = vpop.f32.mrb[69].mxu1 }
 0x3aa   : > { %v2645_v17 = vpop.f32.mrb[36].mxu0  ;;  %v2689_v18 = vpop.f32.mrb[70].mxu1 }
 0x3ab   : > { %v2703_v57 = vadd.f32 %v2699_v54, %v2694_v55  ;;  %v2692_v58 = vadd.f32 %v2645_v17, %v2592_v12  ;;  %v2647_v15 = vpop.f32.mrb[37].mxu0  ;;  %v3033_v6 = vpop.f32.mrb[71].mxu1 }
 0x3ac   : > { %v2693_v47 = vadd.f32 %v2647_v15, %v2593_v50  ;;  %v2649_v59 = vpop.f32.mrb[38].mxu0 }
 0x3ad   : > { %2710 = vst.msk [vmem:[%s292_s26 + $0x8] sm:$0x7] %vm2709_vm5, %v2703_v57  ;;  %v2701_v60 = vadd.f32 %v2699_v54, %v2692_v58  ;;  %v2650_v61 = vpop.f32.mrb[39].mxu0 }
 0x3ae   : > { %v2702_v41 = vadd.f32 %v2699_v54, %v2693_v47 }
 0x3b0   : > { %v2706_v42 = vcombine.low %v2701_v60, %v2702_v41 }
 0x3b2   : > { %2708 = vst [vmem:[%s292_s26] sm:$0x77] %v2706_v42 }
 0x3b3 PF: > { %s18_s24 = sadd.s32 1, %s3142_s24  }
 0x3b4   : > { %p15_p1 = scmp.ge.s32.totalorder %s18_s24, 4  }
 0x3b6   :  { %17 = sbr.rel (!%p15_p1) target bundleno = 1 (0x1), region = 105 }
 0x3bd   :  { %2732 = vsyncpa [#allocation5], 1 }
 0x3be   :  { %2734 = vsyncpa [#allocation5 + $0x1], 1 }

</bundles_post_ra>
